<compile_context>
chip_gen: v5e
topology: v5e:2x2
jax: 0.10.0
libtpu: 0.0.40
codegen_flags: <defaults>
</compile_context>

<pallas_src>
import jax
import jax.numpy as jnp
from jax.experimental import pallas as pl
from jax.experimental.pallas import tpu as pltpu


# --------------------------------------------------------------------------
# Helpers
# --------------------------------------------------------------------------
def _pick_block_batch(B, N, target_rows=256):
    """Batch elements folded into one grid step (MXU row batching).

    Keeps >= 2 grid steps when B >= 2 (so both v7x TensorCores get work and
    the constant-weight DMAs overlap step-0 compute), then grows Bb until the
    heavy matmuls see roughly `target_rows` rows (128 saturates v5e,
    256 saturates v6e/v7x).
    """
    divisors = [d for d in range(1, B + 1) if B % d == 0]
    cands = [d for d in divisors if B // d >= 2] or divisors
    fitting = [d for d in cands if d * N <= target_rows] or [cands[0]]
    return max(fitting)


def _build_pack(mats):
    """Pack small 2-D f32 matrices into one lane-dense slab.

    Each section starts at an 8-aligned (sublane) row offset and column 0, so
    in-kernel static slices stay relayout-free.  Returns (slab, offsets).
    """
    width = max(int(m.shape[1]) for m in mats)
    width = ((width + 127) // 128) * 128
    rows, offs, off = [], [], 0
    for m in mats:
        r, c = int(m.shape[0]), int(m.shape[1])
        r8 = ((r + 7) // 8) * 8
        rows.append(jnp.pad(m.astype(jnp.float32), ((0, r8 - r), (0, width - c))))
        offs.append(off)
        off += r8
    return jnp.concatenate(rows, axis=0), offs


# --------------------------------------------------------------------------
# Host wrapper: parameter re-layout (channel-major kron block weights)
# + pallas_call.  The Pallas kernel is defined as a closure so all shape
# constants and slab offsets are static.
# --------------------------------------------------------------------------
def astgcn_block_forward(x, params, block_batch=None):
    f32, bf16 = jnp.float32, jnp.bfloat16
    B, N, F, T = x.shape
    K = params['cheb'].shape[0]
    Fc = params['theta'].shape[2]
    Ft = params['bt'].shape[0]
    FT, FcT, FtT = F * T, Fc * T, Ft * T

    # This kernel implements time_strides == 1 only (kernel (1,3) pad 1 / 1x1).
    assert params['Wt'].shape == (Ft, Fc, 1, 3), params['Wt'].shape
    assert params['Wr'].shape == (Ft, F, 1, 1), params['Wr'].shape

    Bb = block_batch if block_batch is not None else _pick_block_batch(B, N)
    assert B % Bb == 0, (B, Bb)

    # ---------------- activations (channel-major: pure reshapes) ----------------
    xa = x.astype(f32).reshape(B * N, FT)                      # row n, col f*T+t
    # temporal-attention LHS precomputed on host: lhs[b,t,m] = sum_{n,f} x U1 U2
    lhs = jnp.einsum('bnft,n,fm->btm', x.astype(f32),
                     params['U1'].astype(f32), params['U2'].astype(f32))  # (B,T,N)

    # ---------------- folded weights ----------------
    eye_t = jnp.eye(T, dtype=f32)
    bd3 = jnp.concatenate(
        [jnp.kron(params['U3'].astype(f32)[:, None], eye_t),
         jnp.kron(params['W1'].astype(f32)[:, None], eye_t),
         jnp.kron(params['W3'].astype(f32)[:, None], eye_t)], axis=1)     # (F*T, 3T)
    w2 = params['W2'].astype(f32)                                         # (T, T)
    bst = params['bs'].reshape(N, N).astype(f32).T                        # bs^T
    vst = params['Vs'].astype(f32).T                                      # Vs^T
    chebt = jnp.transpose(params['cheb'].astype(f32), (0, 2, 1)).reshape(K * N, N)
    exmat = jnp.kron(jnp.ones((1, Ft), f32), eye_t)                       # (T, Ft*T)
    rows_mat = jnp.stack(
        [jnp.repeat(params['bt'].astype(f32) + params['br'].astype(f32), T),
         jnp.repeat(params['gamma'].astype(f32), T),
         jnp.repeat(params['beta'].astype(f32), T)], axis=0)              # (3, Ft*T)
    wpack, (o_rows, o_bd3, o_w2, o_bst, o_vst, o_ex, o_cheb) = _build_pack(
        [rows_mat, bd3, w2, bst, vst, exmat, chebt])

    theta = params['theta'].astype(f32)                                   # (K, F, Fc)
    thetabd = jnp.stack([jnp.kron(theta[k], eye_t) for k in range(K)],
                        axis=0).astype(bf16)                              # (K, F*T, Fc*T)

    # Block-tridiagonal (1,3) temporal conv (stride 1, pad 1), channel-major:
    # wbig[c*T + t, o*T + t'] = Wt[o, c, 0, t - t' + 1]
    wt = params['Wt'][:, :, 0, :].astype(f32)                             # (Ft, Fc, 3)
    wbig = jnp.zeros((FcT, FtT), f32)
    for j in range(3):
        wbig = wbig + jnp.kron(wt[:, :, j].T, jnp.eye(T, k=1 - j, dtype=f32))
    wbig = wbig.astype(bf16)                                              # (Fc*T, Ft*T)
    wrbd = jnp.kron(params['Wr'][:, :, 0, 0].astype(f32).T, eye_t).astype(bf16)  # (F*T, Ft*T)

    # ---------------- kernel (closure over static sizes / offsets) ----------------
    def kernel(xa_ref, lhs_ref, wpack_ref, thetabd_ref, wbig_ref, wrbd_ref,
               out_ref, mix_ref):
        # unpack the small-weight slab (static, sublane-aligned views)
        rows_blk = wpack_ref[pl.ds(o_rows, 8), pl.ds(0, FtT)]
        bias_row = rows_blk[0:1]                     # bt + br   (1, Ft*T)
        gamma_row = rows_blk[1:2]
        beta_row = rows_blk[2:3]
        bd3_w = wpack_ref[pl.ds(o_bd3, FT), pl.ds(0, 3 * T)]
        w2_w = wpack_ref[pl.ds(o_w2, T), pl.ds(0, T)]
        bst_w = wpack_ref[pl.ds(o_bst, N), pl.ds(0, N)]
        vst_w = wpack_ref[pl.ds(o_vst, N), pl.ds(0, N)]
        ex_w = wpack_ref[pl.ds(o_ex, T), pl.ds(0, FtT)]

        xa_v = xa_ref[...]                           # (Bb*N, F*T) f32
        xa_bf = xa_v.astype(bf16)

        # ---- per-batch-element temporal + spatial attention (tiny matmuls) ----
        satt = []
        for i in range(Bb):
            xa_b = xa_v[i * N:(i + 1) * N, :]                            # (N, F*T)
            lhs_tn = lhs_ref[i]                                          # (T, N)
            proj = jnp.dot(xa_b, bd3_w, preferred_element_type=f32)      # (N, 3T)
            rhs_nt = proj[:, 0:T]            # U3 . x
            a1_nt = proj[:, T:2 * T]         # W1 . x
            a3_nt = proj[:, 2 * T:3 * T]     # W3 . x
            # temporal attention E (Ve = I, be = 0 in the PyTorch layer)
            e = jax.nn.sigmoid(jnp.dot(lhs_tn, rhs_nt, preferred_element_type=f32))
            e = jnp.exp(e)                   # sigmoid in (0,1): no max needed
            e = e / jnp.sum(e, axis=0, keepdims=True)        # softmax(dim=1)
            # spatial attention S^T (x_TAt folded algebraically, never built)
            ew2 = jnp.dot(e, w2_w, preferred_element_type=f32)
            slhs = jnp.dot(a1_nt, ew2, preferred_element_type=f32)       # (N, T)
            srhs = jnp.dot(a3_nt, e, preferred_element_type=f32)         # (N, T)
            prod_t = jax.lax.dot_general(srhs, slhs, (((1,), (1,)), ((), ())),
                                         preferred_element_type=f32)     # prod^T
            s_t = jnp.dot(jax.nn.sigmoid(prod_t + bst_w), vst_w,
                          preferred_element_type=f32)                    # S^T
            s_t = jnp.exp(s_t - jnp.max(s_t, axis=1, keepdims=True))
            satt.append(s_t / jnp.sum(s_t, axis=1, keepdims=True))       # softmax(S,1)^T

        # ---- Chebyshev graph conv: per-element graph mix (N rows) staged into a
        #      (Bb*N, F*T) VMEM slab, then ONE row-batched Theta matmul per k ----
        gcn = jnp.zeros((Bb * N, FcT), f32)
        for k in range(K):
            cheb_k = wpack_ref[pl.ds(o_cheb + k * N, N), pl.ds(0, N)]    # cheb_k^T
            for i in range(Bb):
                a_kt = (cheb_k * satt[i]).astype(bf16)                   # (T_k*SAt)^T
                mix_ref[pl.ds(i * N, N), :] = jnp.dot(
                    a_kt, xa_bf[i * N:(i + 1) * N, :],
                    preferred_element_type=f32).astype(bf16)
            gcn = gcn + jnp.dot(mix_ref[...], thetabd_ref[k],
                                preferred_element_type=f32)              # (Bb*N, Fc*T)
        gcn = jnp.maximum(gcn, 0.0)                                      # ReLU

        # ---- time_conv (1,3) + residual (1x1, bf16) + ReLU, row-batched ----
        tconv = jnp.dot(gcn.astype(bf16), wbig_ref[...], preferred_element_type=f32)
        res = jnp.dot(xa_bf, wrbd_ref[...], preferred_element_type=f32)
        z = jnp.maximum(tconv + res + bias_row, 0.0)                     # (Bb*N, Ft*T)

        # ---- LayerNorm over the Ft channels of every (n, t) column group ----
        inv_ft = 1.0 / Ft
        mean_nt = jax.lax.dot_general(z, ex_w, (((1,), (1,)), ((), ())),
                                      preferred_element_type=f32) * inv_ft   # (Bb*N, T)
        mean_full = jnp.dot(mean_nt, ex_w, preferred_element_type=f32)
        zc = z - mean_full
        var_nt = jax.lax.dot_general(zc * zc, ex_w, (((1,), (1,)), ((), ())),
                                     preferred_element_type=f32) * inv_ft
        var_full = jnp.dot(var_nt, ex_w, preferred_element_type=f32)
        zn = zc * jax.lax.rsqrt(var_full + 1e-5)
        out_ref[...] = (zn * gamma_row + beta_row).astype(out_ref.dtype)

    # ---------------- grid / specs ----------------
    def const_spec(a):
        nd = a.ndim
        return pl.BlockSpec(a.shape, lambda b, _nd=nd: (0,) * _nd)

    in_specs = [
        pl.BlockSpec((Bb * N, FT), lambda b: (b, 0)),
        pl.BlockSpec((Bb, T, N), lambda b: (b, 0, 0)),
        const_spec(wpack),
        const_spec(thetabd),
        const_spec(wbig),
        const_spec(wrbd),
    ]
    out_spec = pl.BlockSpec((Bb * N, FtT), lambda b: (b, 0))

    out_flat = pl.pallas_call(
        kernel,
        out_shape=jax.ShapeDtypeStruct((B * N, FtT), jnp.float32),
        grid_spec=pltpu.PrefetchScalarGridSpec(
            num_scalar_prefetch=0,
            grid=(B // Bb,),
            in_specs=in_specs,
            out_specs=out_spec,
            scratch_shapes=[pltpu.VMEM((Bb * N, FT), jnp.bfloat16)],
        ),
        compiler_params=pltpu.CompilerParams(
            dimension_semantics=("parallel",)),
    )(xa, lhs, wpack, thetabd, wbig, wrbd)

    # (B*N, Ft*T) -> (B, N, Ft, T): pure reshape, no transpose.
    return out_flat.reshape(B, N, Ft, T)


# --------------------------------------------------------------------------
# Pure-JAX reference (direct transcription of the PyTorch forward pass).
# --------------------------------------------------------------------------
def astgcn_block_reference(x, params):
    B, N, F, T = x.shape
    U1, U2, U3 = params['U1'], params['U2'], params['U3']
    W1, W2, W3 = params['W1'], params['W2'], params['W3']
    bs, Vs = params['bs'], params['Vs']
    cheb, theta = params['cheb'], params['theta']
    Wt, bt = params['Wt'], params['bt']
    Wr, br = params['Wr'], params['br']
    gamma, beta = params['gamma'], params['beta']
    K = cheb.shape[0]
    Fc = theta.shape[2]
    Ft = bt.shape[0]

    # Temporal attention
    m = jnp.einsum('bnft,n->btf', x, U1)
    lhs = jnp.einsum('btf,fn->btn', m, U2)
    rhs = jnp.einsum('bnft,f->bnt', x, U3)
    product = jnp.einsum('btn,bns->bts', lhs, rhs)
    E = jax.nn.softmax(jax.nn.sigmoid(product), axis=1)

    x_tat = jnp.matmul(x.reshape(B, N * F, T), E).reshape(B, N, F, T)

    # Spatial attention
    slhs = jnp.einsum('bnft,f->bnt', x_tat, W1)
    slhs = jnp.einsum('bnt,ts->bns', slhs, W2)
    srhs = jnp.einsum('bnft,f->bnt', x_tat, W3)
    prod = jnp.einsum('bit,bjt->bij', slhs, srhs)
    S = jnp.einsum('im,bmj->bij', Vs, jax.nn.sigmoid(prod + bs))
    S_norm = jax.nn.softmax(S, axis=1)

    # Chebyshev graph conv with spatial attention
    acc = jnp.zeros((B, N, Fc, T), jnp.float32)
    for k in range(K):
        t_at = cheb[k][None] * S_norm                                  # (B, N, N)
        rhs_k = jnp.einsum('bmn,bmft->bnft', t_at, x)
        acc = acc + jnp.einsum('bnft,fc->bnct', rhs_k, theta[k])
    spatial_gcn = jax.nn.relu(acc)                                     # (B, N, Fc, T)

    # time_conv (kernel (1,3), stride 1, pad (0,1))
    gp = jnp.pad(spatial_gcn, ((0, 0), (0, 0), (0, 0), (1, 1)))
    tout = jnp.zeros((B, N, Ft, T), jnp.float32) + bt[None, None, :, None]
    for j in range(3):
        tout = tout + jnp.einsum('bnct,oc->bnot', gp[..., j:j + T], Wt[:, :, 0, j])

    # residual_conv (1x1, stride 1)
    res = jnp.einsum('bnft,of->bnot', x, Wr[:, :, 0, 0]) + br[None, None, :, None]

    z = jax.nn.relu(tout + res)                                        # (B, N, Ft, T)
    mean = jnp.mean(z, axis=2, keepdims=True)
    var = jnp.mean((z - mean) ** 2, axis=2, keepdims=True)
    z = (z - mean) / jnp.sqrt(var + 1e-5)
    return z * gamma[None, None, :, None] + beta[None, None, :, None]


if __name__ == "__main__":
    B, N, F_in, T = 2, 16, 4, 8
    K, Fc, Ft = 3, 32, 32   # K, nb_chev_filter, nb_time_filter ; time_strides = 1

    key = jax.random.PRNGKey(0)
    keys = jax.random.split(key, 16)
    x = jax.random.normal(keys[0], (B, N, F_in, T), jnp.float32)

    # Chebyshev polynomials of a random symmetric "scaled Laplacian".
    a = jax.random.normal(keys[1], (N, N), jnp.float32) * 0.1
    l_tilde = (a + a.T) / 2.0
    cheb_list = [jnp.eye(N, dtype=jnp.float32), l_tilde]
    for _ in range(2, K):
        cheb_list.append(2.0 * l_tilde @ cheb_list[-1] - cheb_list[-2])
    cheb = jnp.stack(cheb_list[:K])

    params = dict(
        U1=jax.random.normal(keys[2], (N,), jnp.float32) * 0.1,
        U2=jax.random.normal(keys[3], (F_in, N), jnp.float32) * 0.1,
        U3=jax.random.normal(keys[4], (F_in,), jnp.float32) * 0.1,
        W1=jax.random.normal(keys[5], (F_in,), jnp.float32) * 0.1,
        W2=jax.random.normal(keys[6], (T, T), jnp.float32) * 0.1,
        W3=jax.random.normal(keys[7], (F_in,), jnp.float32) * 0.1,
        bs=jax.random.normal(keys[8], (1, N, N), jnp.float32) * 0.1,
        Vs=jax.random.normal(keys[9], (N, N), jnp.float32) * 0.1,
        cheb=cheb,
        theta=jax.random.normal(keys[10], (K, F_in, Fc), jnp.float32) * 0.1,
        Wt=jax.random.normal(keys[11], (Ft, Fc, 1, 3), jnp.float32) * 0.1,
        bt=jax.random.normal(keys[12], (Ft,), jnp.float32) * 0.1,
        Wr=jax.random.normal(keys[13], (Ft, F_in, 1, 1), jnp.float32) * 0.1,
        br=jax.random.normal(keys[14], (Ft,), jnp.float32) * 0.1,
        gamma=1.0 + 0.1 * jax.random.normal(keys[15], (Ft,), jnp.float32),
        beta=jnp.zeros((Ft,), jnp.float32),
    )

    ref = jax.block_until_ready(astgcn_block_reference(x, params))

    # Default path: auto block_batch (Bb=1 -> grid=(2,), both v7x TCs busy).
    out = jax.block_until_ready(jax.jit(astgcn_block_forward)(x, params))
    assert out.shape == (B, N, Ft, T), out.shape
    err1 = float(jnp.max(jnp.abs(out - ref)))
    if not bool(jnp.allclose(out, ref, atol=3e-2, rtol=3e-2)):
        raise AssertionError(f"Pallas output mismatch (Bb=auto), max abs err={err1}")

    # Row-batched path: fold both batch elements into one grid step (32 MXU rows).
    fwd_b2 = jax.jit(lambda xx, pp: astgcn_block_forward(xx, pp, block_batch=2))
    out2 = jax.block_until_ready(fwd_b2(x, params))
    assert out2.shape == (B, N, Ft, T), out2.shape
    err2 = float(jnp.max(jnp.abs(out2 - ref)))
    if not bool(jnp.allclose(out2, ref, atol=3e-2, rtol=3e-2)):
        raise AssertionError(f"Pallas output mismatch (Bb=2), max abs err={err2}")

    print("KERNEL_OK")
</pallas_src>

<mosaic_0001>
module attributes {stable_mosaic.version = 11 : i64} {
  func.func @kernel(%arg0: i32, %arg1: memref<16x32xf32, #tpu.memory_space<vmem>>, %arg2: memref<1x8x16xf32, #tpu.memory_space<vmem>>, %arg3: memref<136x256xf32, #tpu.memory_space<vmem>>, %arg4: memref<3x32x256xbf16, #tpu.memory_space<vmem>>, %arg5: memref<256x256xbf16, #tpu.memory_space<vmem>>, %arg6: memref<32x256xbf16, #tpu.memory_space<vmem>>, %arg7: memref<16x256xf32, #tpu.memory_space<vmem>>, %arg8: memref<16x32xbf16, #tpu.memory_space<vmem>>) attributes {dimension_semantics = [#tpu.dimension_semantics<parallel>], iteration_bounds = array<i64: 2>, scalar_prefetch = 0 : i64, scratch_operands = 1 : i64, tpu.core_type = #tpu.core_type<tc>, window_params = [{transform_indices = @transform_0, window_bounds = array<i64: 16, 32>}, {transform_indices = @transform_1, window_bounds = array<i64: 1, 8, 16>}, {pipeline_mode = #tpu.pipeline_mode<synchronous>, transform_indices = @transform_2, window_bounds = array<i64: 136, 256>}, {pipeline_mode = #tpu.pipeline_mode<synchronous>, transform_indices = @transform_3, window_bounds = array<i64: 3, 32, 256>}, {pipeline_mode = #tpu.pipeline_mode<synchronous>, transform_indices = @transform_4, window_bounds = array<i64: 256, 256>}, {pipeline_mode = #tpu.pipeline_mode<synchronous>, transform_indices = @transform_5, window_bounds = array<i64: 32, 256>}, {transform_indices = @transform_6, window_bounds = array<i64: 16, 256>}]} {
    %c0 = arith.constant 0 : index
    %c0_0 = arith.constant 0 : index
    %0 = vector.load %arg3[%c0, %c0_0] : memref<136x256xf32, #tpu.memory_space<vmem>>, vector<8x256xf32>
    %1 = vector.extract_strided_slice %0 {offsets = [0, 0], sizes = [1, 256], strides = [1, 1]} : vector<8x256xf32> to vector<1x256xf32>
    %2 = vector.extract_strided_slice %0 {offsets = [1, 0], sizes = [1, 256], strides = [1, 1]} : vector<8x256xf32> to vector<1x256xf32>
    %3 = vector.extract_strided_slice %0 {offsets = [2, 0], sizes = [1, 256], strides = [1, 1]} : vector<8x256xf32> to vector<1x256xf32>
    %c8 = arith.constant 8 : index
    %c0_1 = arith.constant 0 : index
    %4 = vector.load %arg3[%c8, %c0_1] : memref<136x256xf32, #tpu.memory_space<vmem>>, vector<32x24xf32>
    %c40 = arith.constant 40 : index
    %c0_2 = arith.constant 0 : index
    %5 = vector.load %arg3[%c40, %c0_2] : memref<136x256xf32, #tpu.memory_space<vmem>>, vector<8x8xf32>
    %c48 = arith.constant 48 : index
    %c0_3 = arith.constant 0 : index
    %6 = vector.load %arg3[%c48, %c0_3] : memref<136x256xf32, #tpu.memory_space<vmem>>, vector<16x16xf32>
    %c64 = arith.constant 64 : index
    %c0_4 = arith.constant 0 : index
    %7 = vector.load %arg3[%c64, %c0_4] : memref<136x256xf32, #tpu.memory_space<vmem>>, vector<16x16xf32>
    %c80 = arith.constant 80 : index
    %c0_5 = arith.constant 0 : index
    %8 = vector.load %arg3[%c80, %c0_5] : memref<136x256xf32, #tpu.memory_space<vmem>>, vector<8x256xf32>
    %c0_6 = arith.constant 0 : index
    %c0_7 = arith.constant 0 : index
    %9 = vector.load %arg1[%c0_6, %c0_7] : memref<16x32xf32, #tpu.memory_space<vmem>>, vector<16x32xf32>
    %10 = arith.truncf %9 : vector<16x32xf32> to vector<16x32xbf16>
    %c0_8 = arith.constant 0 : index
    %c0_9 = arith.constant 0 : index
    %c0_10 = arith.constant 0 : index
    %11 = vector.load %arg2[%c0_8, %c0_9, %c0_10] : memref<1x8x16xf32, #tpu.memory_space<vmem>>, vector<1x8x16xf32>
    %12 = vector.shape_cast %11 : vector<1x8x16xf32> to vector<8x16xf32>
    %cst = arith.constant dense<0.000000e+00> : vector<16x24xf32>
    %13 = tpu.matmul %9, %4, %cst {dimension_numbers = #tpu.dot_dimension_numbers<[1], [0], [0], [1], [0, 0, 1, 1], [], []>} : vector<16x32xf32>, vector<32x24xf32>, vector<16x24xf32> -> vector<16x24xf32>
    %14 = vector.extract_strided_slice %13 {offsets = [0, 0], sizes = [16, 8], strides = [1, 1]} : vector<16x24xf32> to vector<16x8xf32>
    %15 = vector.extract_strided_slice %13 {offsets = [0, 8], sizes = [16, 8], strides = [1, 1]} : vector<16x24xf32> to vector<16x8xf32>
    %16 = vector.extract_strided_slice %13 {offsets = [0, 16], sizes = [16, 8], strides = [1, 1]} : vector<16x24xf32> to vector<16x8xf32>
    %cst_11 = arith.constant dense<0.000000e+00> : vector<8x8xf32>
    %17 = tpu.matmul %12, %14, %cst_11 {dimension_numbers = #tpu.dot_dimension_numbers<[1], [0], [0], [1], [0, 0, 1, 1], [], []>} : vector<8x16xf32>, vector<16x8xf32>, vector<8x8xf32> -> vector<8x8xf32>
    %18 = arith.negf %17 : vector<8x8xf32>
    %19 = math.exp %18 : vector<8x8xf32>
    %cst_12 = arith.constant 1.000000e+00 : f32
    %20 = vector.broadcast %cst_12 : f32 to vector<8x8xf32>
    %21 = arith.addf %20, %19 : vector<8x8xf32>
    %22 = arith.divf %20, %21 : vector<8x8xf32>
    %23 = math.exp %22 : vector<8x8xf32>
    %cst_13 = arith.constant dense<0.000000e+00> : vector<8xf32>
    %24 = vector.multi_reduction <add>, %23, %cst_13 [0] : vector<8x8xf32> to vector<8xf32>
    %25 = vector.shape_cast %24 : vector<8xf32> to vector<1x8xf32>
    %26 = vector.broadcast %25 : vector<1x8xf32> to vector<8x8xf32>
    %27 = arith.divf %23, %26 : vector<8x8xf32>
    %cst_14 = arith.constant dense<0.000000e+00> : vector<8x8xf32>
    %28 = tpu.matmul %27, %5, %cst_14 {dimension_numbers = #tpu.dot_dimension_numbers<[1], [0], [0], [1], [0, 0, 1, 1], [], []>} : vector<8x8xf32>, vector<8x8xf32>, vector<8x8xf32> -> vector<8x8xf32>
    %cst_15 = arith.constant dense<0.000000e+00> : vector<16x8xf32>
    %29 = tpu.matmul %15, %28, %cst_15 {dimension_numbers = #tpu.dot_dimension_numbers<[1], [0], [0], [1], [0, 0, 1, 1], [], []>} : vector<16x8xf32>, vector<8x8xf32>, vector<16x8xf32> -> vector<16x8xf32>
    %cst_16 = arith.constant dense<0.000000e+00> : vector<16x8xf32>
    %30 = tpu.matmul %16, %27, %cst_16 {dimension_numbers = #tpu.dot_dimension_numbers<[1], [0], [0], [1], [0, 0, 1, 1], [], []>} : vector<16x8xf32>, vector<8x8xf32>, vector<16x8xf32> -> vector<16x8xf32>
    %cst_17 = arith.constant dense<0.000000e+00> : vector<16x16xf32>
    %31 = tpu.matmul %30, %29, %cst_17 {dimension_numbers = #tpu.dot_dimension_numbers<[1], [1], [0], [0], [0, 0, 1, 0], [], []>} : vector<16x8xf32>, vector<16x8xf32>, vector<16x16xf32> -> vector<16x16xf32>
    %32 = arith.addf %31, %6 : vector<16x16xf32>
    %33 = arith.negf %32 : vector<16x16xf32>
    %34 = math.exp %33 : vector<16x16xf32>
    %cst_18 = arith.constant 1.000000e+00 : f32
    %35 = vector.broadcast %cst_18 : f32 to vector<16x16xf32>
    %36 = arith.addf %35, %34 : vector<16x16xf32>
    %37 = arith.divf %35, %36 : vector<16x16xf32>
    %cst_19 = arith.constant dense<0.000000e+00> : vector<16x16xf32>
    %38 = tpu.matmul %37, %7, %cst_19 {dimension_numbers = #tpu.dot_dimension_numbers<[1], [0], [0], [1], [0, 0, 1, 1], [], []>} : vector<16x16xf32>, vector<16x16xf32>, vector<16x16xf32> -> vector<16x16xf32>
    %cst_20 = arith.constant dense<0xFF800000> : vector<16xf32>
    %39 = vector.multi_reduction <maximumf>, %38, %cst_20 [1] : vector<16x16xf32> to vector<16xf32>
    %40 = vector.shape_cast %39 : vector<16xf32> to vector<16x1xf32>
    %41 = vector.broadcast %40 : vector<16x1xf32> to vector<16x16xf32>
    %42 = arith.subf %38, %41 : vector<16x16xf32>
    %43 = math.exp %42 : vector<16x16xf32>
    %cst_21 = arith.constant dense<0.000000e+00> : vector<16xf32>
    %44 = vector.multi_reduction <add>, %43, %cst_21 [1] : vector<16x16xf32> to vector<16xf32>
    %45 = vector.shape_cast %44 : vector<16xf32> to vector<16x1xf32>
    %46 = vector.broadcast %45 : vector<16x1xf32> to vector<16x16xf32>
    %47 = arith.divf %43, %46 : vector<16x16xf32>
    %cst_22 = arith.constant 0.000000e+00 : f32
    %48 = vector.broadcast %cst_22 : f32 to vector<16x256xf32>
    %c88 = arith.constant 88 : index
    %c0_23 = arith.constant 0 : index
    %49 = vector.load %arg3[%c88, %c0_23] : memref<136x256xf32, #tpu.memory_space<vmem>>, vector<16x16xf32>
    %50 = arith.mulf %49, %47 : vector<16x16xf32>
    %51 = arith.truncf %50 : vector<16x16xf32> to vector<16x16xbf16>
    %cst_24 = arith.constant dense<0.000000e+00> : vector<16x32xf32>
    %52 = tpu.matmul %51, %10, %cst_24 {dimension_numbers = #tpu.dot_dimension_numbers<[1], [0], [0], [1], [0, 0, 1, 1], [], []>} : vector<16x16xbf16>, vector<16x32xbf16>, vector<16x32xf32> -> vector<16x32xf32>
    %53 = arith.truncf %52 : vector<16x32xf32> to vector<16x32xbf16>
    %c0_25 = arith.constant 0 : index
    %c0_26 = arith.constant 0 : index
    %54 = vector.load %arg8[%c0_25, %c0_26] : memref<16x32xbf16, #tpu.memory_space<vmem>>, vector<16x32xbf16>
    tpu.vector_store %arg8[%c0_25, %c0_26], %53 {strides = array<i32>} : memref<16x32xbf16, #tpu.memory_space<vmem>>, vector<16x32xbf16>,
    %c0_27 = arith.constant 0 : index
    %c0_28 = arith.constant 0 : index
    %55 = vector.load %arg8[%c0_27, %c0_28] : memref<16x32xbf16, #tpu.memory_space<vmem>>, vector<16x32xbf16>
    %c0_29 = arith.constant 0 : index
    %c0_30 = arith.constant 0 : index
    %c0_31 = arith.constant 0 : index
    %56 = vector.load %arg4[%c0_29, %c0_30, %c0_31] : memref<3x32x256xbf16, #tpu.memory_space<vmem>>, vector<1x32x256xbf16>
    %57 = vector.shape_cast %56 : vector<1x32x256xbf16> to vector<32x256xbf16>
    %cst_32 = arith.constant dense<0.000000e+00> : vector<16x256xf32>
    %58 = tpu.matmul %55, %57, %cst_32 {dimension_numbers = #tpu.dot_dimension_numbers<[1], [0], [0], [1], [0, 0, 1, 1], [], []>} : vector<16x32xbf16>, vector<32x256xbf16>, vector<16x256xf32> -> vector<16x256xf32>
    %59 = arith.addf %48, %58 : vector<16x256xf32>
    %c104 = arith.constant 104 : index
    %c0_33 = arith.constant 0 : index
    %60 = vector.load %arg3[%c104, %c0_33] : memref<136x256xf32, #tpu.memory_space<vmem>>, vector<16x16xf32>
    %61 = arith.mulf %60, %47 : vector<16x16xf32>
    %62 = arith.truncf %61 : vector<16x16xf32> to vector<16x16xbf16>
    %cst_34 = arith.constant dense<0.000000e+00> : vector<16x32xf32>
    %63 = tpu.matmul %62, %10, %cst_34 {dimension_numbers = #tpu.dot_dimension_numbers<[1], [0], [0], [1], [0, 0, 1, 1], [], []>} : vector<16x16xbf16>, vector<16x32xbf16>, vector<16x32xf32> -> vector<16x32xf32>
    %64 = arith.truncf %63 : vector<16x32xf32> to vector<16x32xbf16>
    %c0_35 = arith.constant 0 : index
    %c0_36 = arith.constant 0 : index
    %65 = vector.load %arg8[%c0_35, %c0_36] : memref<16x32xbf16, #tpu.memory_space<vmem>>, vector<16x32xbf16>
    tpu.vector_store %arg8[%c0_35, %c0_36], %64 {strides = array<i32>} : memref<16x32xbf16, #tpu.memory_space<vmem>>, vector<16x32xbf16>,
    %c0_37 = arith.constant 0 : index
    %c0_38 = arith.constant 0 : index
    %66 = vector.load %arg8[%c0_37, %c0_38] : memref<16x32xbf16, #tpu.memory_space<vmem>>, vector<16x32xbf16>
    %c1 = arith.constant 1 : index
    %c0_39 = arith.constant 0 : index
    %c0_40 = arith.constant 0 : index
    %67 = vector.load %arg4[%c1, %c0_39, %c0_40] : memref<3x32x256xbf16, #tpu.memory_space<vmem>>, vector<1x32x256xbf16>
    %68 = vector.shape_cast %67 : vector<1x32x256xbf16> to vector<32x256xbf16>
    %cst_41 = arith.constant dense<0.000000e+00> : vector<16x256xf32>
    %69 = tpu.matmul %66, %68, %cst_41 {dimension_numbers = #tpu.dot_dimension_numbers<[1], [0], [0], [1], [0, 0, 1, 1], [], []>} : vector<16x32xbf16>, vector<32x256xbf16>, vector<16x256xf32> -> vector<16x256xf32>
    %70 = arith.addf %59, %69 : vector<16x256xf32>
    %c120 = arith.constant 120 : index
    %c0_42 = arith.constant 0 : index
    %71 = vector.load %arg3[%c120, %c0_42] : memref<136x256xf32, #tpu.memory_space<vmem>>, vector<16x16xf32>
    %72 = arith.mulf %71, %47 : vector<16x16xf32>
    %73 = arith.truncf %72 : vector<16x16xf32> to vector<16x16xbf16>
    %cst_43 = arith.constant dense<0.000000e+00> : vector<16x32xf32>
    %74 = tpu.matmul %73, %10, %cst_43 {dimension_numbers = #tpu.dot_dimension_numbers<[1], [0], [0], [1], [0, 0, 1, 1], [], []>} : vector<16x16xbf16>, vector<16x32xbf16>, vector<16x32xf32> -> vector<16x32xf32>
    %75 = arith.truncf %74 : vector<16x32xf32> to vector<16x32xbf16>
    %c0_44 = arith.constant 0 : index
    %c0_45 = arith.constant 0 : index
    %76 = vector.load %arg8[%c0_44, %c0_45] : memref<16x32xbf16, #tpu.memory_space<vmem>>, vector<16x32xbf16>
    tpu.vector_store %arg8[%c0_44, %c0_45], %75 {strides = array<i32>} : memref<16x32xbf16, #tpu.memory_space<vmem>>, vector<16x32xbf16>,
    %c0_46 = arith.constant 0 : index
    %c0_47 = arith.constant 0 : index
    %77 = vector.load %arg8[%c0_46, %c0_47] : memref<16x32xbf16, #tpu.memory_space<vmem>>, vector<16x32xbf16>
    %c2 = arith.constant 2 : index
    %c0_48 = arith.constant 0 : index
    %c0_49 = arith.constant 0 : index
    %78 = vector.load %arg4[%c2, %c0_48, %c0_49] : memref<3x32x256xbf16, #tpu.memory_space<vmem>>, vector<1x32x256xbf16>
    %79 = vector.shape_cast %78 : vector<1x32x256xbf16> to vector<32x256xbf16>
    %cst_50 = arith.constant dense<0.000000e+00> : vector<16x256xf32>
    %80 = tpu.matmul %77, %79, %cst_50 {dimension_numbers = #tpu.dot_dimension_numbers<[1], [0], [0], [1], [0, 0, 1, 1], [], []>} : vector<16x32xbf16>, vector<32x256xbf16>, vector<16x256xf32> -> vector<16x256xf32>
    %81 = arith.addf %70, %80 : vector<16x256xf32>
    %cst_51 = arith.constant 0.000000e+00 : f32
    %82 = vector.broadcast %cst_51 : f32 to vector<16x256xf32>
    %83 = arith.maximumf %81, %82 : vector<16x256xf32>
    %84 = arith.truncf %83 : vector<16x256xf32> to vector<16x256xbf16>
    %c0_52 = arith.constant 0 : index
    %c0_53 = arith.constant 0 : index
    %85 = vector.load %arg5[%c0_52, %c0_53] : memref<256x256xbf16, #tpu.memory_space<vmem>>, vector<256x256xbf16>
    %cst_54 = arith.constant dense<0.000000e+00> : vector<16x256xf32>
    %86 = tpu.matmul %84, %85, %cst_54 {dimension_numbers = #tpu.dot_dimension_numbers<[1], [0], [0], [1], [0, 0, 1, 1], [], []>} : vector<16x256xbf16>, vector<256x256xbf16>, vector<16x256xf32> -> vector<16x256xf32>
    %c0_55 = arith.constant 0 : index
    %c0_56 = arith.constant 0 : index
    %87 = vector.load %arg6[%c0_55, %c0_56] : memref<32x256xbf16, #tpu.memory_space<vmem>>, vector<32x256xbf16>
    %cst_57 = arith.constant dense<0.000000e+00> : vector<16x256xf32>
    %88 = tpu.matmul %10, %87, %cst_57 {dimension_numbers = #tpu.dot_dimension_numbers<[1], [0], [0], [1], [0, 0, 1, 1], [], []>} : vector<16x32xbf16>, vector<32x256xbf16>, vector<16x256xf32> -> vector<16x256xf32>
    %89 = arith.addf %86, %88 : vector<16x256xf32>
    %90 = vector.broadcast %1 : vector<1x256xf32> to vector<16x256xf32>
    %91 = arith.addf %89, %90 : vector<16x256xf32>
    %cst_58 = arith.constant 0.000000e+00 : f32
    %92 = vector.broadcast %cst_58 : f32 to vector<16x256xf32>
    %93 = arith.maximumf %91, %92 : vector<16x256xf32>
    %cst_59 = arith.constant dense<0.000000e+00> : vector<16x8xf32>
    %94 = tpu.matmul %93, %8, %cst_59 {dimension_numbers = #tpu.dot_dimension_numbers<[1], [1], [0], [0], [0, 0, 1, 0], [], []>} : vector<16x256xf32>, vector<8x256xf32>, vector<16x8xf32> -> vector<16x8xf32>
    %cst_60 = arith.constant 3.125000e-02 : f32
    %95 = vector.broadcast %cst_60 : f32 to vector<16x8xf32>
    %96 = arith.mulf %94, %95 : vector<16x8xf32>
    %cst_61 = arith.constant dense<0.000000e+00> : vector<16x256xf32>
    %97 = tpu.matmul %96, %8, %cst_61 {dimension_numbers = #tpu.dot_dimension_numbers<[1], [0], [0], [1], [0, 0, 1, 1], [], []>} : vector<16x8xf32>, vector<8x256xf32>, vector<16x256xf32> -> vector<16x256xf32>
    %98 = arith.subf %93, %97 : vector<16x256xf32>
    %99 = arith.mulf %98, %98 : vector<16x256xf32>
    %cst_62 = arith.constant dense<0.000000e+00> : vector<16x8xf32>
    %100 = tpu.matmul %99, %8, %cst_62 {dimension_numbers = #tpu.dot_dimension_numbers<[1], [1], [0], [0], [0, 0, 1, 0], [], []>} : vector<16x256xf32>, vector<8x256xf32>, vector<16x8xf32> -> vector<16x8xf32>
    %cst_63 = arith.constant 3.125000e-02 : f32
    %101 = vector.broadcast %cst_63 : f32 to vector<16x8xf32>
    %102 = arith.mulf %100, %101 : vector<16x8xf32>
    %cst_64 = arith.constant dense<0.000000e+00> : vector<16x256xf32>
    %103 = tpu.matmul %102, %8, %cst_64 {dimension_numbers = #tpu.dot_dimension_numbers<[1], [0], [0], [1], [0, 0, 1, 1], [], []>} : vector<16x8xf32>, vector<8x256xf32>, vector<16x256xf32> -> vector<16x256xf32>
    %cst_65 = arith.constant 9.99999974E-6 : f32
    %104 = vector.broadcast %cst_65 : f32 to vector<16x256xf32>
    %105 = arith.addf %103, %104 : vector<16x256xf32>
    %106 = math.rsqrt %105 : vector<16x256xf32>
    %107 = arith.mulf %98, %106 : vector<16x256xf32>
    %108 = vector.broadcast %2 : vector<1x256xf32> to vector<16x256xf32>
    %109 = arith.mulf %107, %108 : vector<16x256xf32>
    %110 = vector.broadcast %3 : vector<1x256xf32> to vector<16x256xf32>
    %111 = arith.addf %109, %110 : vector<16x256xf32>
    %c0_66 = arith.constant 0 : index
    %c0_67 = arith.constant 0 : index
    %112 = vector.load %arg7[%c0_66, %c0_67] : memref<16x256xf32, #tpu.memory_space<vmem>>, vector<16x256xf32>
    tpu.vector_store %arg7[%c0_66, %c0_67], %111 {strides = array<i32>} : memref<16x256xf32, #tpu.memory_space<vmem>>, vector<16x256xf32>,
    return
  }
  func.func @transform_0(%arg0: i32) -> (i32, i32) {
    %c0_i32 = arith.constant 0 : i32
    %c0_i32_0 = arith.constant 0 : i32
    return %arg0, %c0_i32 : i32, i32
  }
  func.func @transform_1(%arg0: i32) -> (i32, i32, i32) {
    %c0_i32 = arith.constant 0 : i32
    %c0_i32_0 = arith.constant 0 : i32
    %c0_i32_1 = arith.constant 0 : i32
    return %arg0, %c0_i32, %c0_i32_0 : i32, i32, i32
  }
  func.func @transform_2(%arg0: i32) -> (i32, i32) {
    %c0_i32 = arith.constant 0 : i32
    %c0_i32_0 = arith.constant 0 : i32
    %c0_i32_1 = arith.constant 0 : i32
    return %c0_i32, %c0_i32_0 : i32, i32
  }
  func.func @transform_3(%arg0: i32) -> (i32, i32, i32) {
    %c0_i32 = arith.constant 0 : i32
    %c0_i32_0 = arith.constant 0 : i32
    %c0_i32_1 = arith.constant 0 : i32
    %c0_i32_2 = arith.constant 0 : i32
    return %c0_i32, %c0_i32_0, %c0_i32_1 : i32, i32, i32
  }
  func.func @transform_4(%arg0: i32) -> (i32, i32) {
    %c0_i32 = arith.constant 0 : i32
    %c0_i32_0 = arith.constant 0 : i32
    %c0_i32_1 = arith.constant 0 : i32
    return %c0_i32, %c0_i32_0 : i32, i32
  }
  func.func @transform_5(%arg0: i32) -> (i32, i32) {
    %c0_i32 = arith.constant 0 : i32
    %c0_i32_0 = arith.constant 0 : i32
    %c0_i32_1 = arith.constant 0 : i32
    return %c0_i32, %c0_i32_0 : i32, i32
  }
  func.func @transform_6(%arg0: i32) -> (i32, i32) {
    %c0_i32 = arith.constant 0 : i32
    %c0_i32_0 = arith.constant 0 : i32
    return %arg0, %c0_i32 : i32, i32
  }
}

</mosaic_0001>

<bundles_post_ra>
// kernel: astgcn_block_forward.1
= control target key start
LH: loop header
LB: loop body
LE: loop exit
PB: predicated region body
PF: predicated region fallthrough
CT: control target
= control target key end

     0   :  { %s1957_s21 = smov 0   ;;  %s2416_s0 = inlined_call_operand.vmem [shape: f32[32,32], index: 0, kind: input, shape index: {}]   ;;  %s2417_s1 = inlined_call_operand.vmem [shape: f32[2,8,16], index: 1, kind: input, shape index: {}]   ;;  %s2418_s2 = inlined_call_operand.vmem [shape: f32[136,256], index: 2, kind: input, shape index: {}]   ;;  %s2419_s3 = inlined_call_operand.vmem [shape: bf16[3,32,256], index: 3, kind: input, shape index: {}]   ;;  %s2420_s4 = inlined_call_operand.vmem [shape: bf16[256,256], index: 4, kind: input, shape index: {}]   ;;  %s2421_s5 = inlined_call_operand.vmem [shape: bf16[32,256], index: 5, kind: input, shape index: {}]   ;;  %s2422_s6 = inlined_call_operand.vmem [shape: f32[32,256], index: 6, kind: output, shape index: {}]  }
   0x1 LB: > { %s1555_s22 = sadd.s32 4294967295, %s1918_s21   ;;  %p1559_p0 = scmp.ge.s32.totalorder %s1918_s21, 1  ;;  %s1918_s21 = sphi %s1957_s21, %s16_s21  }
   0x2   : > { %p222_p1 = scmp.lt.s32.totalorder %s1918_s21, 3 }
   0x4   : > { %p223_p2 = pnand %p1559_p0, %p222_p1 }
   0x5   : > { %s1560_s27 = sshll.u32 (!%p223_p2), %s1555_s22, 1  ;;  %p263_p4 = scmp.lt.s32.totalorder (!%p223_p2), %s1555_s22, 1 }
   0x6   : > { %226 = sbr.rel (%p223_p2) target bundleno = 2370 (0x942), region = 44  ;;  %p258_p3 = scmp.lt.s32.totalorder (!%p223_p2), %s1560_s27, 3 }
   0x7   : > { %s1920_s12 = smov (!%p223_p2), 112   ;;  %s1921_s13 = smov (!%p223_p2), 120  }
   0xb   : > { %v280_v0 = vld [vmem:[%s2418_s2 + $0x40] sm:$0xff]  ;;  %v279_v1 = vld [vmem:[%s2418_s2 + $0x30] sm:$0xff]  ;;  %s2424_s27 = smov (!%p258_p3, %s1560_s27), 3  ;;  %vm292_vm0 = vcmask 261120   ;;  %s2426_s22 = smov (!%p263_p4, %s1555_s22), 1  ;;  %vm322_vm1 = vcmask 130048  }
   0xc   : > { %311 = vmatpush.msra.mxu0 %v280_v0  ;;  %v278_v2 = vld [vmem:[%s2418_s2 + $0x20] sm:$0xff]  ;;  %v277_v3 = vld [vmem:[%s2418_s2 + $0x10] sm:$0xff]  ;;  %s1561_s8 = sshll.u32 %s2424_s27, 3  ;;  %s1562_s14 = sshll.u32 %s2426_s22, 3  ;;  %vm367_vm6 = vcmask 64512  }
   0xd   : > { %s261_s11 = scalar_lea.vmem %s2416_s0, %s1561_s8  ;;  %s266_s17 = scalar_lea.vmem %s2417_s1, %s1562_s14  ;;  %v281_v10 = vld [vmem:[%s2418_s2 + $0x50] sm:$0xff]  ;;  %v284_v55 = vld [vmem:[%s2418_s2 + $0x80] sm:$0xff] }
   0xe   : > { %312 = vmatpush.msra.mxu0 %v279_v1  ;;  %v288_v4 = vld [vmem:[%s261_s11] sm:$0xff]  ;;  %v289_v5 = vld [vmem:[%s261_s11 + $0x8] sm:$0xff]  ;;  %408 = vmatpush.msra.mxu2 %v281_v10  ;;  %v285_v54 = vld [vmem:[%s2418_s2 + $0x90] sm:$0xff]  ;;  %s1816_s20 = sshll.u32 %s2424_s27, 4 }
   0xf   : > { %v1984_v6 = vpack.c.bf16 %v289_v5, %v288_v4  ;;  %v291_v9 = vld [vmem:[%s266_s17] sm:$0xff]  ;;  %v283_v60 = vld [vmem:[%s2418_s2 + $0x70] sm:$0xff]  ;;  %s2402_s24 = scalar_lea.vmem %s2422_s6, %s1816_s20 }
  0x10   : > { %313 = vmatpush.msra.mxu0 %v278_v2  ;;  %v282_v56 = vld [vmem:[%s2418_s2 + $0x60] sm:$0xff] }
  0x12   : > { %314 = vmatpush.msra.mxu0 %v277_v3 }
  0x13   : > { %1566 = vmatmul.msk.f32.vlgmr.msra.gmra.mxu0 %vm292_vm0, %v288_v4 }
  0x14   : > { %642 = vmatpush.bf16.msrb.mxu0 %v1984_v6 }
  0x1b   : > { %1567 = vmatmul.msk.f32.gmra.mxu0 %vm292_vm0, %v289_v5 }
  0x90   : > { %v316_v7 = vpop.f32.mrf.mxu0 }
  0x91   : > { %446 = vrot.lane.b32.xlu1 %v316_v7, %s1920_s12  ;;  %415 = vrot.lane.b32.xlu0 %v316_v7, %s1921_s13 }
  0x98   : > { %v319_v8 = vpop.f32.mrf.mxu0 }
  0x99   : > { %448 = vrot.lane.b32.xlu1 %v319_v8, %s1920_s12  ;;  %417 = vrot.lane.b32.xlu0 %v319_v8, %s1921_s13 }
  0x9a   : > { %340 = vmatpush.msra.mxu1 %v319_v8 }
  0x9c   : > { %341 = vmatpush.msra.mxu1 %v316_v7 }
  0x9d   : > { %1568 = vmatmul.msk.f32.vlgmr.msra.gmra.mxu1 %vm322_vm1, %v291_v9 }
 0x103   : > { %v447_v45 = vpop.permute.xlu1 %446  ;;  %v416_v47 = vpop.permute.xlu0 %415 }
 0x10b   : > { %v449_v46 = vpop.permute.xlu1 %448  ;;  %v418_v49 = vpop.permute.xlu0 %417 }
 0x11a   : > { %v343_v11 = vpop.f32.mrf.mxu1 }
 0x11b   : > { %v1569_v12 = vmul.f32 -1.442695, %v343_v11 }
 0x11d   : > { %1880 = vpow2.f32 %v1569_v12 }
 0x123   : > { %v1881_v13 = vpop.eup %1880 }
 0x124   : > { %v349_v14 = vadd.f32 1.0, %v1881_v13 }
 0x126   : > { %1882 = vrcp.f32 %v349_v14  ;;  %v361_v18 = vand.u32 2147483648, %v349_v14  ;;  %v359_v20 = vand.u32 2147483647, %v349_v14  ;;  %vm355_vm3 = vweird.f32 %v349_v14 }
 0x128   : > { %v362_v22 = vor.u32 1.1754944e-38, %v361_v18  ;;  %vm360_vm5 = vcmp.eq.f32.partialorder %v359_v20, 8.507059e+37 }
 0x12c   : > { %v1883_v15 = vpop.eup %1882 }
 0x12d   : > { %v351_v16 = vmul.f32 %v1883_v15, %v349_v14  ;;  %vm356_vm2 = vweird.f32 %v1883_v15 }
 0x12e   : > { %vm357_vm4 = vmor %vm355_vm3, %vm356_vm2 }
 0x12f   : > { %v352_v17 = vsub.f32 1.0, %v351_v16 }
 0x131   : > { %v353_v19 = vmul.f32 %v1883_v15, %v352_v17 }
 0x133   : > { %v354_v21 = vadd.f32 %v1883_v15, %v353_v19 }
 0x135   : > { %v358_v23 = vsel %vm357_vm4, %v1883_v15, %v354_v21 }
 0x136   : > { %v363_v24 = vsel %vm360_vm5, %v362_v22, %v358_v23 }
 0x137   : > { %v365_v25 = vmul.f32 1.442695, %v363_v24 }
 0x139   : > { %1884 = vpow2.f32 %v365_v25 }
 0x13f   : > { %v1885_v26 = vpop.eup %1884 }
 0x140   : > { %v368_v27 = vsel %vm367_vm6, %v1885_v26, 0.0 }
 0x141   : > { %v369_v28 = vrot.slane %v368_v27, 4 }
 0x143   : > { %v370_v29 = vadd.f32 %v369_v28, %v368_v27 }
 0x145   : > { %v371_v30 = vrot.slane %v370_v29, 2 }
 0x147   : > { %v372_v31 = vadd.f32 %v371_v30, %v370_v29 }
 0x149   : > { %v373_v32 = vrot.slane %v372_v31, 1 }
 0x14b   : > { %v374_v33 = vadd.f32 %v373_v32, %v372_v31 }
 0x14d   : > { %1886 = vrcp.f32 %v374_v33  ;;  %v386_v37 = vand.u32 2147483648, %v374_v33  ;;  %v384_v39 = vand.u32 2147483647, %v374_v33  ;;  %vm380_vm8 = vweird.f32 %v374_v33 }
 0x14f   : > { %v387_v41 = vor.u32 1.1754944e-38, %v386_v37  ;;  %vm385_vm10 = vcmp.eq.f32.partialorder %v384_v39, 8.507059e+37 }
 0x153   : > { %v1887_v34 = vpop.eup %1886 }
 0x154   : > { %v376_v35 = vmul.f32 %v1887_v34, %v374_v33  ;;  %vm381_vm7 = vweird.f32 %v1887_v34 }
 0x155   : > { %vm382_vm9 = vmor %vm380_vm8, %vm381_vm7 }
 0x156   : > { %v377_v36 = vsub.f32 1.0, %v376_v35 }
 0x158   : > { %v378_v38 = vmul.f32 %v1887_v34, %v377_v36 }
 0x15a   : > { %v379_v40 = vadd.f32 %v1887_v34, %v378_v38 }
 0x15c   : > { %v383_v42 = vsel %vm382_vm9, %v1887_v34, %v379_v40 }
 0x15d   : > { %v388_v43 = vsel %vm385_vm10, %v387_v41, %v383_v42 }
 0x15e   : > { %v389_v44 = vmul.f32 %v1885_v26, %v388_v43 }
 0x160   : > { %1570 = vmatmul.msk.f32.vlgmr.msra.gmra.mxu2 %vm367_vm6, %v389_v44 }
 0x161   : > { %469 = vmatpush.msrb.mxu2 %v389_v44 }
 0x163   : > { %675 = vmatpush.bf16.msra.mxu2 %v1984_v6 }
 0x168   : > { %1573 = vmatmul.msk.f32.vlgmr.msrb.gmra.mxu2 %vm367_vm6, %v447_v45 }
 0x170   : > { %1574 = vmatmul.msk.f32.gmra.mxu2 %vm367_vm6, %v449_v46 }
 0x1e3   : > { %v410_v48 = vpop.f32.mrf.mxu2 }
 0x1e4   : > { %438 = vmatpush.msra.mxu3 %v410_v48 }
 0x1e5   : > { %1571 = vmatmul.msk.f32.vlgmr.msra.gmra.mxu3 %vm367_vm6, %v416_v47 }
 0x1eb   : > { %v471_v51 = vpop.f32.mrf.mxu2 }
 0x1ed   : > { %1572 = vmatmul.msk.f32.gmra.mxu3 %vm367_vm6, %v418_v49 }
 0x1f3   : > { %v474_v53 = vpop.f32.mrf.mxu2 }
 0x268   : > { %v440_v50 = vpop.f32.mrf.mxu3 }
 0x270   : > { %v443_v52 = vpop.f32.mrf.mxu3 }
 0x271   : > { %1575 = vmatpush.xpose.msk.msrb.mxu1 %vm367_vm6, %v443_v52  ;;  %1868 = vmatpush.xpose.msk.msrb.mxu3 %vm367_vm6, %v443_v52 }
 0x275   : > { %1576 = vmatpush.xpose.msk.msrb.mxu1 %vm367_vm6, %v440_v50  ;;  %1869 = vmatpush.xpose.msk.msrb.mxu3 %vm367_vm6, %v440_v50 }
 0x278   : > { %1577 = vmatmul.msk.f32.vlgmr.msrb.gmra.mxu1 %vm367_vm6, %v471_v51  ;;  %1578 = vmatmul.msk.f32.vlgmr.msrb.gmra.mxu3 %vm367_vm6, %v474_v53 }
 0x279   : > { %570 = vmatpush.msra.mxu3 %v285_v54 }
 0x27b   : > { %571 = vmatpush.msra.mxu3 %v284_v55 }
 0x2f5   : > { %v506_v57 = vpop.f32.mrf.mxu1 }
 0x2f6   : > { %v507_v58 = vadd.f32 %v506_v57, %v282_v56 }
 0x2f8   : > { %v1579_v59 = vmul.f32 -1.442695, %v507_v58 }
 0x2fa   : > { %1888 = vpow2.f32 %v1579_v59 }
 0x2fb   : > { %v509_v61 = vpop.f32.mrf.mxu3 }
 0x2fc   : > { %v510_v62 = vadd.f32 %v509_v61, %v283_v60  ;;  %v627_v61 = vld [vmem:[%s2418_s2 + $0xb0] sm:$0xff] }
 0x2fe   : > { %v1580_v63 = vmul.f32 -1.442695, %v510_v62  ;;  %v660_v62 = vld [vmem:[%s2418_s2 + $0xd0] sm:$0xff] }
 0x300   : > { %v1889_v0 = vpop.eup %1888  ;;  %1890 = vpow2.f32 %v1580_v63  ;;  %v805_v63 = vld [vmem:[%s2418_s2 + $0xf0] sm:$0xff] }
 0x301   : > { %v518_v1 = vadd.f32 1.0, %v1889_v0 }
 0x303   : > { %1892 = vrcp.f32 %v518_v1  ;;  %v531_v8 = vand.u32 2147483648, %v518_v1  ;;  %v529_v10 = vand.u32 2147483647, %v518_v1  ;;  %vm525_vm12 = vweird.f32 %v518_v1 }
 0x305   : > { %v532_v14 = vor.u32 1.1754944e-38, %v531_v8  ;;  %vm530_vm14 = vcmp.eq.f32.partialorder %v529_v10, 8.507059e+37 }
 0x306   : > { %v1891_v2 = vpop.eup %1890 }
 0x307   : > { %v519_v3 = vadd.f32 1.0, %v1891_v2  ;;  %v661_v2 = vld [vmem:[%s2418_s2 + $0xe0] sm:$0xff] }
 0x309   : > { %v1893_v4 = vpop.eup %1892  ;;  %1894 = vrcp.f32 %v519_v3  ;;  %v546_v19 = vand.u32 2147483648, %v519_v3  ;;  %vm540_vm2 = vweird.f32 %v519_v3  ;;  %v544_v21 = vand.u32 2147483647, %v519_v3 }
 0x30a   : > { %v521_v5 = vmul.f32 %v1893_v4, %v518_v1  ;;  %vm526_vm11 = vweird.f32 %v1893_v4  ;;  %v628_v1 = vld [vmem:[%s2418_s2 + $0xc0] sm:$0xff] }
 0x30b   : > { %vm527_vm13 = vmor %vm525_vm12, %vm526_vm11  ;;  %v547_v23 = vor.u32 1.1754944e-38, %v546_v19  ;;  %vm545_vm4 = vcmp.eq.f32.partialorder %v544_v21, 8.507059e+37  ;;  %v1627_v19 = vld [vmem:[%s2419_s3 + $0x18] sm:$0xf0]  ;;  %v1617_v21 = vld [vmem:[%s2419_s3] sm:$0xf] }
 0x30c   : > { %v522_v7 = vsub.f32 1.0, %v521_v5 }
 0x30e   : > { %v523_v9 = vmul.f32 %v1893_v4, %v522_v7 }
 0x30f   : > { %v1895_v11 = vpop.eup %1894 }
 0x310   : > { %v524_v12 = vadd.f32 %v1893_v4, %v523_v9  ;;  %v536_v13 = vmul.f32 %v1895_v11, %v519_v3  ;;  %vm541_vm15 = vweird.f32 %v1895_v11  ;;  %v806_v3 = vld [vmem:[%s2418_s2 + $0x100] sm:$0xff] }
 0x311   : > { %vm542_vm3 = vmor %vm540_vm2, %vm541_vm15 }
 0x312   : > { %v528_v15 = vsel %vm527_vm13, %v1893_v4, %v524_v12  ;;  %v537_v16 = vsub.f32 1.0, %v536_v13 }
 0x313   : > { %v533_v17 = vsel %vm530_vm14, %v532_v14, %v528_v15  ;;  %v1625_v15 = vld [vmem:[%s2419_s3 + $0x10] sm:$0xf]  ;;  %vm651_vm14 = vcmask 257024  }
 0x314   : > { %1581 = vmatmul.msk.f32.vlgmr.msra.gmra.mxu3 %vm322_vm1, %v533_v17  ;;  %v538_v18 = vmul.f32 %v1895_v11, %v537_v16  ;;  %v1821_v16 = vld [vmem:[%s2419_s3 + $0x14] sm:$0xf0]  ;;  %v1820_v17 = vld [vmem:[%s2419_s3 + $0x14] sm:$0xf] }
 0x316   : > { %v539_v20 = vadd.f32 %v1895_v11, %v538_v18  ;;  %v1626_v18 = vor.u32 %v1821_v16, %v1625_v15  ;;  %v1861_v15 = vld [vmem:[%s2420_s4 + $0xe4] sm:$0xf0] }
 0x318   : > { %v543_v22 = vsel %vm542_vm3, %v1895_v11, %v539_v20  ;;  %v1630_v20 = vor.u32 %v1820_v17, %v1627_v19  ;;  %783 = vmatpush.bf16.msra.mxu0 %v1626_v18 }
 0x319   : > { %v548_v24 = vsel %vm545_vm4, %v547_v23, %v543_v22  ;;  %v1819_v22 = vld [vmem:[%s2419_s3 + $0x4] sm:$0xf0]  ;;  %v1818_v23 = vld [vmem:[%s2419_s3 + $0x4] sm:$0xf] }
 0x31a   : > { %797 = vmatpush.bf16.msrb.mxu2 %v1630_v20  ;;  %v1860_v20 = vld [vmem:[%s2420_s4 + $0xe4] sm:$0xf] }
 0x31c   : > { %1582 = vmatmul.msk.f32.gmra.mxu3 %vm322_vm1, %v548_v24  ;;  %v1618_v24 = vor.u32 %v1819_v22, %v1617_v21  ;;  %v1794_v21 = vld [vmem:[%s2420_s4 + $0xe8] sm:$0xf0]  ;;  %v1662_v22 = vld [vmem:[%s2421_s5] sm:$0xf] }
 0x31e   : > { %784 = vmatpush.bf16.msra.mxu0 %v1618_v24  ;;  %v1736_v24 = vld [vmem:[%s2420_s4 + $0x70] sm:$0xf] }
 0x397   : > { %v573_v25 = vpop.f32.mrf.mxu3 }
 0x398   : > { %v579_v26 = vsel %vm322_vm1, %v573_v25, -inf }
 0x399   : > { %580 = vmax.xlane.f32.xlu2 %v579_v26 }
 0x39f   : > { %v576_v27 = vpop.f32.mrf.mxu3 }
 0x3a0   : > { %v582_v28 = vsel %vm322_vm1, %v576_v27, -inf }
 0x3a1   : > { %583 = vmax.xlane.f32.xlu2 %v582_v28  ;;  %v1826_v28 = vld [vmem:[%s2419_s3 + $0x34] sm:$0xf0] }
 0x40c   : > { %v581_v29 = vpop.xlane.xlu2 %580 }
 0x40d   : > { %v585_v30 = vsub.f32 %v573_v25, %v581_v29  ;;  %v1619_v25 = vld [vmem:[%s2419_s3 + $0x8] sm:$0xf0]  ;;  %v1825_v29 = vld [vmem:[%s2419_s3 + $0x34] sm:$0xf] }
 0x40e   : > { %v1622_v26 = vor.u32 %v1818_v23, %v1619_v25  ;;  %v1865_v23 = vld [vmem:[%s2421_s5 + $0x4] sm:$0xf0]  ;;  %v1847_v25 = vld [vmem:[%s2420_s4 + $0x74] sm:$0xf0] }
 0x40f   : > { %v587_v31 = vmul.f32 1.442695, %v585_v30 }
 0x410   : > { %798 = vmatpush.bf16.msrb.mxu2 %v1622_v26  ;;  %v1663_v26 = vor.u32 %v1865_v23, %v1662_v22  ;;  %v1752_v23 = vld [vmem:[%s2420_s4 + $0x90] sm:$0xf] }
 0x411   : > { %1896 = vpow2.f32 %v587_v31  ;;  %v1605_v31 = vld [vmem:[%s2419_s3 + $0x38] sm:$0xf0] }
 0x414   : > { %v584_v32 = vpop.xlane.xlu2 %583 }
 0x415   : > { %v586_v33 = vsub.f32 %v576_v27, %v584_v32  ;;  %v1603_v27 = vld [vmem:[%s2419_s3 + $0x30] sm:$0xf]  ;;  %v1608_v32 = vor.u32 %v1825_v29, %v1605_v31  ;;  %v1738_v29 = vld [vmem:[%s2420_s4 + $0x78] sm:$0xf0] }
 0x416   : > { %v1604_v30 = vor.u32 %v1826_v28, %v1603_v27  ;;  %v1737_v27 = vor.u32 %v1847_v25, %v1736_v24  ;;  %v1846_v28 = vld [vmem:[%s2420_s4 + $0x74] sm:$0xf]  ;;  %v1851_v24 = vld [vmem:[%s2420_s4 + $0x94] sm:$0xf0] }
 0x417   : > { %v1897_v34 = vpop.eup %1896  ;;  %v589_v35 = vmul.f32 1.442695, %v586_v33  ;;  %v1595_v33 = vld [vmem:[%s2419_s3 + $0x20] sm:$0xf]  ;;  %741 = vmatpush.bf16.msrb.mxu3 %v1608_v32  ;;  %v1741_v31 = vor.u32 %v1846_v28, %v1738_v29  ;;  %v1859_v32 = vld [vmem:[%s2420_s4 + $0xd4] sm:$0xf0] }
 0x418   : > { %v591_v36 = vsel %vm322_vm1, %v1897_v34, 0.0  ;;  %727 = vmatpush.bf16.msra.mxu1 %v1604_v30  ;;  %v1784_v30 = vld [vmem:[%s2420_s4 + $0xd0] sm:$0xf]  ;;  %v1850_v25 = vld [vmem:[%s2420_s4 + $0x94] sm:$0xf] }
 0x419   : > { %1898 = vpow2.f32 %v589_v35  ;;  %592 = vadd.xlane.f32.xlu0 %v591_v36  ;;  %v1823_v35 = vld [vmem:[%s2419_s3 + $0x24] sm:$0xf]  ;;  %v1696_v29 = vld [vmem:[%s2420_s4 + $0x20] sm:$0xf] }
 0x41f   : > { %v1899_v37 = vpop.eup %1898 }
 0x420   : > { %v594_v38 = vsel %vm322_vm1, %v1899_v37, 0.0 }
 0x421   : > { %595 = vadd.xlane.f32.xlu1 %v594_v38 }
 0x48c   : > { %v593_v39 = vpop.xlane.xlu0 %592 }
 0x48d   : > { %1900 = vrcp.f32 %v593_v39  ;;  %v608_v46 = vand.u32 2147483648, %v593_v39  ;;  %vm602_vm7 = vweird.f32 %v593_v39  ;;  %v606_v48 = vand.u32 2147483647, %v593_v39 }
 0x48f   : > { %v609_v51 = vor.u32 1.1754944e-38, %v608_v46  ;;  %vm607_vm9 = vcmp.eq.f32.partialorder %v606_v48, 8.507059e+37 }
 0x493   : > { %v1901_v40 = vpop.eup %1900 }
 0x494   : > { %v598_v41 = vmul.f32 %v1901_v40, %v593_v39  ;;  %v596_v42 = vpop.xlane.xlu1 %595  ;;  %vm603_vm5 = vweird.f32 %v1901_v40 }
 0x495   : > { %1902 = vrcp.f32 %v596_v42  ;;  %vm604_vm8 = vmor %vm602_vm7, %vm603_vm5  ;;  %v623_v53 = vand.u32 2147483648, %v596_v42  ;;  %v621_v56 = vand.u32 2147483647, %v596_v42  ;;  %vm617_vm11 = vweird.f32 %v596_v42 }
 0x496   : > { %v599_v43 = vsub.f32 1.0, %v598_v41 }
 0x497   : > { %v624_v59 = vor.u32 1.1754944e-38, %v623_v53  ;;  %vm622_vm13 = vcmp.eq.f32.partialorder %v621_v56, 8.507059e+37  ;;  %v1830_v53 = vld [vmem:[%s2419_s3 + $0x54] sm:$0xf]  ;;  %v1644_v56 = vld [vmem:[%s2419_s3 + $0x40] sm:$0xf] }
 0x498   : > { %v600_v44 = vmul.f32 %v1901_v40, %v599_v43 }
 0x49a   : > { %v601_v45 = vadd.f32 %v1901_v40, %v600_v44 }
 0x49b   : > { %v1903_v47 = vpop.eup %1902 }
 0x49c   : > { %v613_v49 = vmul.f32 %v1903_v47, %v596_v42  ;;  %v605_v50 = vsel %vm604_vm8, %v1901_v40, %v601_v45  ;;  %vm618_vm10 = vweird.f32 %v1903_v47 }
 0x49d   : > { %v610_v54 = vsel %vm607_vm9, %v609_v51, %v605_v50  ;;  %vm619_vm12 = vmor %vm617_vm11, %vm618_vm10  ;;  %v1652_v51 = vld [vmem:[%s2419_s3 + $0x50] sm:$0xf] }
 0x49e   : > { %v614_v52 = vsub.f32 1.0, %v613_v49  ;;  %v611_v58 = vmul.f32 %v1897_v34, %v610_v54  ;;  %v1824_v34 = vld [vmem:[%s2419_s3 + $0x24] sm:$0xf0] }
 0x49f   : > { %v1596_v36 = vor.u32 %v1824_v34, %v1595_v33  ;;  %v1858_v33 = vld [vmem:[%s2420_s4 + $0xd4] sm:$0xf]  ;;  %v1786_v34 = vld [vmem:[%s2420_s4 + $0xd8] sm:$0xf0] }
 0x4a0   : > { %v615_v55 = vmul.f32 %v1903_v47, %v614_v52  ;;  %v629_v5 = vmul.f32 %v627_v61, %v611_v58  ;;  %v662_v7 = vmul.f32 %v660_v62, %v611_v58  ;;  %v807_v10 = vmul.f32 %v805_v63, %v611_v58  ;;  %v1831_v52 = vld [vmem:[%s2419_s3 + $0x54] sm:$0xf0] }
 0x4a1   : > { %728 = vmatpush.bf16.msra.mxu1 %v1596_v36  ;;  %v1653_v54 = vor.u32 %v1831_v52, %v1652_v51  ;;  %v1785_v36 = vor.u32 %v1859_v32, %v1784_v30  ;;  %v1722_v51 = vld [vmem:[%s2420_s4 + $0x58] sm:$0xf0]  ;;  %v1837_v30 = vld [vmem:[%s2420_s4 + $0x24] sm:$0xf0] }
 0x4a2   : > { %v616_v57 = vadd.f32 %v1903_v47, %v615_v55  ;;  %v1654_v55 = vld [vmem:[%s2419_s3 + $0x58] sm:$0xf0]  ;;  %v1697_v32 = vor.u32 %v1837_v30, %v1696_v29 }
 0x4a3   : > { %v1657_v58 = vor.u32 %v1830_v53, %v1654_v55  ;;  %v1856_v53 = vld [vmem:[%s2420_s4 + $0xc4] sm:$0xf] }
 0x4a4   : > { %v620_v60 = vsel %vm619_vm12, %v1903_v47, %v616_v57  ;;  %v1829_v57 = vld [vmem:[%s2419_s3 + $0x44] sm:$0xf0] }
 0x4a5   : > { %v625_v0 = vsel %vm622_vm13, %v624_v59, %v620_v60  ;;  %820 = vmatpush.bf16.msrb.mxu1 %v1984_v6  ;;  %v1828_v59 = vld [vmem:[%s2419_s3 + $0x44] sm:$0xf]  ;;  %v1646_v60 = vld [vmem:[%s2419_s3 + $0x48] sm:$0xf0]  ;;  %v1645_v61 = vor.u32 %v1829_v57, %v1644_v56 }
 0x4a6   : > { %v626_v4 = vmul.f32 %v1899_v37, %v625_v0  ;;  %v1597_v37 = vld [vmem:[%s2419_s3 + $0x28] sm:$0xf0]  ;;  %v1649_v62 = vor.u32 %v1828_v59, %v1646_v60  ;;  %v1866_v0 = vld [vmem:[%s2421_s5 + $0x14] sm:$0xf] }
 0x4a7   : > { %v1600_v38 = vor.u32 %v1823_v35, %v1597_v37  ;;  %v1797_v35 = vor.u32 %v1860_v20, %v1794_v21  ;;  %v1728_v37 = vld [vmem:[%s2420_s4 + $0x60] sm:$0xf]  ;;  %v1706_v21 = vld [vmem:[%s2420_s4 + $0x38] sm:$0xf0] }
 0x4a8   : > { %v630_v8 = vmul.f32 %v628_v1, %v626_v4  ;;  %v663_v9 = vmul.f32 %v661_v2, %v626_v4  ;;  %v808_v11 = vmul.f32 %v806_v3, %v626_v4  ;;  %v1672_v1 = vld [vmem:[%s2421_s5 + $0x18] sm:$0xf0]  ;;  %v1864_v2 = vld [vmem:[%s2421_s5 + $0x4] sm:$0xf]  ;;  %v1664_v4 = vld [vmem:[%s2421_s5 + $0x8] sm:$0xf0] }
 0x4a9   : > { %742 = vmatpush.bf16.msrb.mxu3 %v1600_v38  ;;  %v1675_v3 = vor.u32 %v1866_v0, %v1672_v1  ;;  %v1845_v38 = vld [vmem:[%s2420_s4 + $0x64] sm:$0xf0]  ;;  %v1770_v1 = vld [vmem:[%s2420_s4 + $0xb8] sm:$0xf0] }
 0x4aa   : > { %v631_v12 = vpack.c.bf16 %v630_v8, %v629_v5  ;;  %v664_v13 = vpack.c.bf16 %v663_v9, %v662_v7  ;;  %v809_v14 = vpack.c.bf16 %v808_v11, %v807_v10  ;;  %v1800_v5 = vld [vmem:[%s2420_s4 + $0xf0] sm:$0xf]  ;;  %v1863_v7 = vld [vmem:[%s2420_s4 + $0xf4] sm:$0xf0]  ;;  %v1862_v9 = vld [vmem:[%s2420_s4 + $0xf4] sm:$0xf] }
 0x4ab   : > { %v1801_v8 = vor.u32 %v1863_v7, %v1800_v5  ;;  %v1802_v10 = vld [vmem:[%s2420_s4 + $0xf8] sm:$0xf0]  ;;  %v1670_v11 = vld [vmem:[%s2421_s5 + $0x10] sm:$0xf]  ;;  %v1840_v5 = vld [vmem:[%s2420_s4 + $0x44] sm:$0xf] }
 0x4ac   : > { %1583 = vmatmul.msk.bf16.vlgmr.msrb.gmra.mxu0 %vm322_vm1, %v631_v12  ;;  %1584 = vmatmul.msk.bf16.vlgmr.msra.gmra.mxu2 %vm322_vm1, %v664_v13  ;;  %v1667_v12 = vor.u32 %v1864_v2, %v1664_v4  ;;  %v1867_v13 = vld [vmem:[%s2421_s5 + $0x14] sm:$0xf0]  ;;  %v1805_v17 = vor.u32 %v1862_v9, %v1802_v10  ;;  %v1841_v4 = vld [vmem:[%s2420_s4 + $0x44] sm:$0xf0]  ;;  %v1760_v10 = vld [vmem:[%s2420_s4 + $0xa0] sm:$0xf] }
 0x4ad   : > { %872 = vmatpush.bf16.msra.mxu3 %v1653_v54  ;;  %886 = vmatpush.bf16.msrb.mxu0 %v1657_v58  ;;  %v1671_v18 = vor.u32 %v1867_v13, %v1670_v11  ;;  %v1778_v54 = vld [vmem:[%s2420_s4 + $0xc8] sm:$0xf0]  ;;  %v1853_v11 = vld [vmem:[%s2420_s4 + $0xa4] sm:$0xf0] }
 0x4ae   : > { %v1781_v57 = vor.u32 %v1856_v53, %v1778_v54  ;;  %v1761_v13 = vor.u32 %v1853_v11, %v1760_v10 }
 0x4af   : > { %969 = vmatpush.bf16.msra.mxu2 %v1671_v18  ;;  %v1839_v18 = vld [vmem:[%s2420_s4 + $0x34] sm:$0xf0] }
 0x4b1   : > { %873 = vmatpush.bf16.msra.mxu3 %v1645_v61  ;;  %887 = vmatpush.bf16.msrb.mxu0 %v1649_v62  ;;  %v1855_v61 = vld [vmem:[%s2420_s4 + $0xb4] sm:$0xf0]  ;;  %v1854_v62 = vld [vmem:[%s2420_s4 + $0xb4] sm:$0xf] }
 0x4b2   : > { %v1773_v2 = vor.u32 %v1854_v62, %v1770_v1 }
 0x4b3   : > { %970 = vmatpush.bf16.msra.mxu2 %v1663_v26  ;;  %v1753_v26 = vor.u32 %v1851_v24, %v1752_v23 }
 0x529   : > { %v644_v39 = vpop.f32.mrf.mxu0 }
 0x52a   : > { %v649_v40 = vpack.c.bf16 %v644_v39, %v644_v39  ;;  %v1844_v39 = vld [vmem:[%s2420_s4 + $0x64] sm:$0xf] }
 0x52c   : > { %652 = vst.msk [vmem:[#allocation2] sm:$0xf] %vm651_vm14, %v649_v40  ;;  %v1729_v40 = vor.u32 %v1845_v38, %v1728_v37  ;;  %v1848_v37 = vld [vmem:[%s2420_s4 + $0x84] sm:$0xf] }
 0x52f   : > { %v677_v41 = vpop.f32.mrf.mxu2 }
 0x530   : > { %v682_v43 = vpack.c.bf16 %v677_v41, %v677_v41  ;;  %v1730_v41 = vld [vmem:[%s2420_s4 + $0x68] sm:$0xf0] }
 0x531   : > { %v646_v42 = vpop.f32.mrf.mxu0 }
 0x532   : > { %v650_v44 = vpack.c.bf16 %v646_v42, %v646_v42  ;;  %v1776_v42 = vld [vmem:[%s2420_s4 + $0xc0] sm:$0xf] }
 0x533   : > { %v1613_v45 = vld [vmem:[#allocation2] sm:$0xf] }
 0x534   : > { %684 = vst.msk [vmem:[#allocation2] sm:$0xf] %vm651_vm14, %v682_v43  ;;  %v1857_v43 = vld [vmem:[%s2420_s4 + $0xc4] sm:$0xf0] }
 0x535   : > { %653 = vst.msk [vmem:[#allocation2 + $0x4] sm:$0xf] %vm651_vm14, %v650_v44  ;;  %v1720_v44 = vld [vmem:[%s2420_s4 + $0x50] sm:$0xf] }
 0x537   : > { %v679_v46 = vpop.f32.mrf.mxu2 }
 0x538   : > { %v683_v47 = vpack.c.bf16 %v679_v46, %v679_v46  ;;  %v1843_v46 = vld [vmem:[%s2420_s4 + $0x54] sm:$0xf0] }
 0x539   : > { %v1721_v55 = vor.u32 %v1843_v46, %v1720_v44 }
 0x53c   : > { %v1817_v48 = vld [vmem:[#allocation2] sm:$0xf0] }
 0x53d   : > { %685 = vst.msk [vmem:[#allocation2 + $0x4] sm:$0xf] %vm651_vm14, %v683_v47  ;;  %v1614_v49 = vor.u32 %v1817_v48, %v1613_v45  ;;  %v1733_v45 = vor.u32 %v1844_v39, %v1730_v41  ;;  %v1789_v48 = vor.u32 %v1858_v33, %v1786_v34  ;;  %v1698_v33 = vld [vmem:[%s2420_s4 + $0x28] sm:$0xf0]  ;;  %v1688_v41 = vld [vmem:[%s2420_s4 + $0x10] sm:$0xf] }
 0x53e   : > { %v1746_v39 = vld [vmem:[%s2420_s4 + $0x88] sm:$0xf0] }
 0x53f   : > { %1631 = vmatmul.msk.bf16.vlgmr.msra.gmra.mxu0 %vm292_vm0, %v1614_v49  ;;  %1632 = vmatmul.msk.bf16.vlgmr.msrb.gmra.mxu2 %vm292_vm0, %v1614_v49  ;;  %v1777_v49 = vor.u32 %v1857_v43, %v1776_v42  ;;  %v1835_v42 = vld [vmem:[%s2420_s4 + $0x14] sm:$0xf0]  ;;  %v1834_v43 = vld [vmem:[%s2420_s4 + $0x14] sm:$0xf] }
 0x540   : > { %1165 = vmatpush.bf16.msra.mxu0 %v1801_v8  ;;  %1179 = vmatpush.bf16.msrb.mxu2 %v1741_v31  ;;  %v1714_v8 = vld [vmem:[%s2420_s4 + $0x48] sm:$0xf0]  ;;  %v1836_v31 = vld [vmem:[%s2420_s4 + $0x24] sm:$0xf]  ;;  %v1689_v44 = vor.u32 %v1835_v42, %v1688_v41 }
 0x541   : > { %v1717_v9 = vor.u32 %v1840_v5, %v1714_v8  ;;  %v1701_v34 = vor.u32 %v1836_v31, %v1698_v33 }
 0x544   : > { %v1822_v50 = vld [vmem:[#allocation2] sm:$0xff]  ;;  %1180 = vmatpush.bf16.msrb.mxu2 %v1733_v45  ;;  %v1690_v45 = vld [vmem:[%s2420_s4 + $0x18] sm:$0xf0] }
 0x545   : > { %1609 = vmatmul.msk.bf16.vlgmr.msra.gmra.mxu1 %vm292_vm0, %v1822_v50  ;;  %1610 = vmatmul.msk.bf16.vlgmr.msrb.gmra.mxu3 %vm292_vm0, %v1822_v50  ;;  %v1842_v50 = vld [vmem:[%s2420_s4 + $0x54] sm:$0xf]  ;;  %v1693_v46 = vor.u32 %v1834_v43, %v1690_v45 }
 0x546   : > { %983 = vmatpush.bf16.msra.mxu1 %v1675_v3  ;;  %1151 = vmatpush.bf16.msrb.mxu3 %v1737_v27  ;;  %v1725_v56 = vor.u32 %v1842_v50, %v1722_v51  ;;  %v1712_v3 = vld [vmem:[%s2420_s4 + $0x40] sm:$0xf]  ;;  %v1754_v27 = vld [vmem:[%s2420_s4 + $0x98] sm:$0xf0]  ;;  %v1832_v50 = vld [vmem:[%s2420_s4 + $0x4] sm:$0xf] }
 0x547   : > { %v1713_v7 = vor.u32 %v1841_v4, %v1712_v3  ;;  %v1757_v28 = vor.u32 %v1850_v25, %v1754_v27 }
 0x548   : > { %1181 = vmatpush.bf16.msrb.mxu2 %v1725_v56 }
 0x54a   : > { %984 = vmatpush.bf16.msra.mxu1 %v1667_v12  ;;  %1152 = vmatpush.bf16.msrb.mxu3 %v1729_v40  ;;  %v1852_v12 = vld [vmem:[%s2420_s4 + $0xa4] sm:$0xf]  ;;  %v1749_v40 = vor.u32 %v1848_v37, %v1746_v39 }
 0x54c   : > { %1182 = vmatpush.bf16.msrb.mxu2 %v1717_v9 }
 0x54e   : > { %1153 = vmatpush.bf16.msrb.mxu3 %v1721_v55 }
 0x54f   : > { %1676 = vmatmul.msk.bf16.vlgmr.msra.gmra.mxu2 %vm292_vm0, %v1984_v6 }
 0x552   : > { %1154 = vmatpush.bf16.msrb.mxu3 %v1713_v7 }
 0x555   : > { %1633 = vmatmul.msk.bf16.vlgmr.msrb.gmra.mxu1 %vm322_vm1, %v809_v14  ;;  %v1792_v14 = vld [vmem:[%s2420_s4 + $0xe0] sm:$0xf] }
 0x556   : > { %v1793_v19 = vor.u32 %v1861_v15, %v1792_v14  ;;  %1193 = vmatpush.bf16.msrb.mxu1 %v1805_v17  ;;  %v1762_v14 = vld [vmem:[%s2420_s4 + $0xa8] sm:$0xf0]  ;;  %v1704_v17 = vld [vmem:[%s2420_s4 + $0x30] sm:$0xf] }
 0x557   : > { %v1765_v15 = vor.u32 %v1852_v12, %v1762_v14  ;;  %v1705_v20 = vor.u32 %v1839_v18, %v1704_v17  ;;  %v286_v14 = vld [vmem:[%s2418_s2 + $0xa0] sm:$0xff] }
 0x558   : > { %1166 = vmatpush.bf16.msra.mxu0 %v1793_v19  ;;  %v1838_v19 = vld [vmem:[%s2420_s4 + $0x34] sm:$0xf] }
 0x559   : > { %v1709_v22 = vor.u32 %v1838_v19, %v1706_v21  ;;  %1155 = vmatpush.bf16.msrb.mxu3 %v1705_v20  ;;  %v2367_v19 = vld [vmem:[%s2418_s2] sm:$0xff]  ;;  %v2372_v20 = vld [vmem:[%s2418_s2 + $0x8] sm:$0xff] }
 0x55a   : > { %1194 = vmatpush.bf16.msrb.mxu1 %v1797_v35  ;;  %v1744_v35 = vld [vmem:[%s2420_s4 + $0x80] sm:$0xf] }
 0x55b   : > { %1183 = vmatpush.bf16.msrb.mxu2 %v1709_v22 }
 0x55c   : > { %1167 = vmatpush.bf16.msra.mxu0 %v1785_v36  ;;  %v1849_v36 = vld [vmem:[%s2420_s4 + $0x84] sm:$0xf0] }
 0x55d   : > { %1156 = vmatpush.bf16.msrb.mxu3 %v1697_v32  ;;  %v1745_v38 = vor.u32 %v1849_v36, %v1744_v35 }
 0x55e   : > { %1195 = vmatpush.bf16.msrb.mxu1 %v1789_v48  ;;  %v1680_v48 = vld [vmem:[%s2420_s4] sm:$0xf] }
 0x55f   : > { %1184 = vmatpush.bf16.msrb.mxu2 %v1701_v34 }
 0x560   : > { %1168 = vmatpush.bf16.msra.mxu0 %v1777_v49  ;;  %v1833_v49 = vld [vmem:[%s2420_s4 + $0x4] sm:$0xf0] }
 0x561   : > { %1157 = vmatpush.bf16.msrb.mxu3 %v1689_v44  ;;  %v1681_v51 = vor.u32 %v1833_v49, %v1680_v48 }
 0x562   : > { %1196 = vmatpush.bf16.msrb.mxu1 %v1781_v57 }
 0x563   : > { %1185 = vmatpush.bf16.msrb.mxu2 %v1693_v46 }
 0x565   : > { %1677 = vmatmul.msk.bf16.vlgmr.msra.gmra.mxu1 %vm292_vm0, %v1984_v6  ;;  %v1768_v6 = vld [vmem:[%s2420_s4 + $0xb0] sm:$0xf]  ;;  %1158 = vmatpush.bf16.msrb.mxu3 %v1681_v51 }
 0x566   : > { %v1769_v0 = vor.u32 %v1855_v61, %v1768_v6  ;;  %1197 = vmatpush.bf16.msrb.mxu1 %v1773_v2 }
 0x568   : > { %1169 = vmatpush.bf16.msra.mxu0 %v1769_v0 }
 0x56a   : > { %1198 = vmatpush.bf16.msrb.mxu1 %v1765_v15 }
 0x56c   : > { %1170 = vmatpush.bf16.msra.mxu0 %v1761_v13 }
 0x56e   : > { %1199 = vmatpush.bf16.msrb.mxu1 %v1757_v28  ;;  %v1208_v28 = vperm.slane %v2372_v20, 0 }
 0x570   : > { %1171 = vmatpush.bf16.msra.mxu0 %v1753_v26  ;;  %v1207_v26 = vperm.slane %v2367_v19, 0 }
 0x572   : > { %1200 = vmatpush.bf16.msrb.mxu1 %v1749_v40 }
 0x574   : > { %1172 = vmatpush.bf16.msra.mxu0 %v1745_v38 }
 0x5c2   : > { %v2128_v63 = vpop.f32.mrf.mxu1  ;;  %v800_v56 = vpop.f32.mrf.mxu2 }
 0x5c8   : > { %v744_v54 = vpop.f32.mrf.mxu3 }
 0x5ca   : > { %v2166_v16 = vpop.f32.mrf.mxu1 }
 0x5d0   : > { %v746_v57 = vpop.f32.mrf.mxu3 }
 0x5d2   : > { %v822_v47 = vpop.f32.mrf.mxu1 }
 0x5d3   : > { %v827_v52 = vpack.c.bf16 %v822_v47, %v822_v47  ;;  %v786_v47 = vpop.f32.mrf.mxu0 }
 0x5d4   : > { %v787_v2 = vadd.f32 %v786_v47, %v2128_v63  ;;  %v287_v63 = vld [vmem:[%s2418_s2 + $0xa8] sm:$0xff] }
 0x5d5   : > { %829 = vst.msk [vmem:[#allocation2] sm:$0xf] %vm651_vm14, %v827_v52  ;;  %v1682_v52 = vld [vmem:[%s2420_s4 + $0x8] sm:$0xf0]  ;;  %1309 = vmatpush.msra.mxu1 %v287_v63 }
 0x5d6   : > { %v1685_v53 = vor.u32 %v1832_v50, %v1682_v52 }
 0x5d8   : > { %1186 = vmatpush.bf16.msrb.mxu2 %v1685_v53 }
 0x5da   : > { %v824_v58 = vpop.f32.mrf.mxu1 }
 0x5db   : > { %v828_v59 = vpack.c.bf16 %v824_v58, %v824_v58  ;;  %v788_v55 = vpop.f32.mrf.mxu0 }
 0x5dc   : > { %v789_v5 = vadd.f32 %v788_v55, %v2166_v16  ;;  %1286 = vmatpush.msra.mxu2 %v286_v14 }
 0x5dd   : > { %830 = vst.msk [vmem:[#allocation2 + $0x4] sm:$0xf] %vm651_vm14, %v828_v59  ;;  %v801_v59 = vadd.f32 %v800_v56, %v744_v54 }
 0x5e2   : > { %v986_v16 = vpop.f32.mrf.mxu1 }
 0x5e4   : > { %v1827_v60 = vld [vmem:[#allocation2] sm:$0xff] }
 0x5e5   : > { %1658 = vmatmul.msk.bf16.vlgmr.msra.gmra.mxu3 %vm292_vm0, %v1827_v60  ;;  %1659 = vmatmul.msk.bf16.vlgmr.msrb.gmra.mxu0 %vm292_vm0, %v1827_v60  ;;  %v802_v60 = vpop.f32.mrf.mxu2 }
 0x5e6   : > { %v803_v61 = vadd.f32 %v802_v60, %v746_v57  ;;  %1232 = vmatpush.xpose.msra.mxu3 %v286_v14  ;;  %1255 = vmatpush.xpose.msrb.mxu0 %v287_v63 }
 0x5ea   : > { %v988_v17 = vpop.f32.mrf.mxu1 }
 0x5ed   : > { %v972_v15 = vpop.f32.mrf.mxu2 }
 0x5f5   : > { %v974_v18 = vpop.f32.mrf.mxu2 }
 0x662   : > { %v889_v58 = vpop.f32.mrf.mxu0 }
 0x663   : > { %v895_v62 = vadd.f32 %v889_v58, %v801_v59 }
 0x665   : > { %v899_v3 = vmax.f32 %v895_v62, 0.0 }
 0x668   : > { %v875_v6 = vpop.f32.mrf.mxu3 }
 0x669   : > { %v894_v7 = vadd.f32 %v875_v6, %v787_v2 }
 0x66a   : > { %v891_v0 = vpop.f32.mrf.mxu0 }
 0x66b   : > { %v897_v1 = vadd.f32 %v891_v0, %v803_v61  ;;  %v898_v11 = vmax.f32 %v894_v7, 0.0 }
 0x66d   : > { %v901_v4 = vmax.f32 %v897_v1, 0.0 }
 0x66f   : > { %v903_v8 = vpack.c.bf16 %v901_v4, %v899_v3 }
 0x670   : > { %v877_v9 = vpop.f32.mrf.mxu3 }
 0x671   : > { %v896_v10 = vadd.f32 %v877_v9, %v789_v5  ;;  %1173 = vmatmul.bf16.vlgmr.msra.gmra.mxu0 %v903_v8  ;;  %1201 = vmatmul.bf16.vlgmr.msrb.gmra.mxu1 %v903_v8 }
 0x672   : > { %1363 = vmatpush.xpose.msra.mxu0 %v287_v63  ;;  %1417 = vmatpush.msrb.mxu1 %v287_v63 }
 0x673   : > { %v900_v12 = vmax.f32 %v896_v10, 0.0 }
 0x675   : > { %v902_v13 = vpack.c.bf16 %v900_v12, %v898_v11 }
 0x677   : > { %1159 = vmatmul.bf16.vlgmr.msrb.gmra.mxu3 %v902_v13  ;;  %1187 = vmatmul.bf16.vlgmr.msrb.gmra.mxu2 %v902_v13 }
 0x678   : > { %1340 = vmatpush.xpose.msrb.mxu3 %v286_v14  ;;  %1394 = vmatpush.msrb.mxu2 %v286_v14 }
 0x6ee   : > { %v1174_v21 = vpop.f32.mrf.mxu0  ;;  %v1202_v22 = vpop.f32.mrf.mxu1 }
 0x6f6   : > { %v1176_v39 = vpop.f32.mrf.mxu0  ;;  %v1204_v40 = vpop.f32.mrf.mxu1 }
 0x6fa   : > { %v1160_v23 = vpop.f32.mrf.mxu3  ;;  %v1188_v24 = vpop.f32.mrf.mxu2 }
 0x6fb   : > { %v1161_v25 = vadd.f32 %v1160_v23, %v972_v15  ;;  %v1189_v27 = vadd.f32 %v1188_v24, %v986_v16 }
 0x6fd   : > { %v1175_v29 = vadd.f32 %v1174_v21, %v1161_v25  ;;  %v1203_v30 = vadd.f32 %v1202_v22, %v1189_v27 }
 0x6ff   : > { %v1209_v31 = vadd.f32 %v1207_v26, %v1175_v29  ;;  %v1210_v32 = vadd.f32 %v1208_v28, %v1203_v30 }
 0x701   : > { %v1213_v33 = vmax.f32 %v1209_v31, 0.0  ;;  %v1214_v34 = vmax.f32 %v1210_v32, 0.0  ;;  %v1470_v32 = vperm.slane %v2372_v20, 1 }
 0x702   : > { %v1162_v35 = vpop.f32.mrf.mxu3  ;;  %v1190_v36 = vpop.f32.mrf.mxu2 }
 0x703   : > { %v1163_v37 = vadd.f32 %v1162_v35, %v974_v18  ;;  %v1191_v38 = vadd.f32 %v1190_v36, %v988_v17  ;;  %1233 = vmatmul.f32.vlgmr.msra.gmra.mxu3 %v1213_v33  ;;  %1256 = vmatmul.f32.vlgmr.msrb.gmra.mxu0 %v1214_v34  ;;  %v1476_v36 = vperm.slane %v2372_v20, 2 }
 0x705   : > { %v1177_v41 = vadd.f32 %v1176_v39, %v1163_v37  ;;  %v1205_v42 = vadd.f32 %v1204_v40, %v1191_v38 }
 0x707   : > { %v1211_v43 = vadd.f32 %v1207_v26, %v1177_v41  ;;  %v1212_v44 = vadd.f32 %v1208_v28, %v1205_v42 }
 0x709   : > { %v1215_v45 = vmax.f32 %v1211_v43, 0.0  ;;  %v1216_v46 = vmax.f32 %v1212_v44, 0.0 }
 0x70b   : > { %1236 = vmatmul.f32.gmra.mxu3 %v1215_v45  ;;  %1259 = vmatmul.f32.gmra.mxu0 %v1216_v46 }
 0x780   : > { %v1257_v47 = vpop.f32.mrf.mxu0 }
 0x786   : > { %v1234_v48 = vpop.f32.mrf.mxu3 }
 0x787   : > { %v1258_v49 = vadd.f32 %v1257_v47, %v1234_v48 }
 0x788   : > { %v1260_v51 = vpop.f32.mrf.mxu0 }
 0x789   : > { %v1263_v50 = vmul.f32 0.03125, %v1258_v49  ;;  %v1475_v49 = vperm.slane %v2367_v19, 2 }
 0x78b   : > { %1806 = vmatmul.msk.f32.vlgmr.msra.gmra.mxu2 %vm367_vm6, %v1263_v50  ;;  %1808 = vmatmul.msk.f32.vlgmr.msra.gmra.mxu1 %vm367_vm6, %v1263_v50 }
 0x78e   : > { %v1237_v52 = vpop.f32.mrf.mxu3 }
 0x78f   : > { %v1261_v53 = vadd.f32 %v1260_v51, %v1237_v52 }
 0x791   : > { %v1264_v54 = vmul.f32 0.03125, %v1261_v53 }
 0x793   : > { %1807 = vmatmul.msk.f32.gmra.mxu2 %vm367_vm6, %v1264_v54  ;;  %1809 = vmatmul.msk.f32.gmra.mxu1 %vm367_vm6, %v1264_v54 }
 0x808   : > { %v1311_v55 = vpop.f32.mrf.mxu1 }
 0x809   : > { %v1318_v56 = vsub.f32 %v1214_v34, %v1311_v55 }
 0x80b   : > { %v1322_v57 = vmul.f32 %v1318_v56, %v1318_v56 }
 0x80d   : > { %1364 = vmatmul.f32.vlgmr.msra.gmra.mxu0 %v1322_v57 }
 0x80e   : > { %v1288_v58 = vpop.f32.mrf.mxu2 }
 0x80f   : > { %v2380_v59 = vsub.f32 %v1213_v33, %v1288_v58 }
 0x810   : > { %v1314_v60 = vpop.f32.mrf.mxu1 }
 0x811   : > { %v1321_v6 = vmul.f32 %v2380_v59, %v2380_v59  ;;  %v2384_v61 = vsub.f32 %v1216_v46, %v1314_v60 }
 0x813   : > { %1341 = vmatmul.f32.vlgmr.msrb.gmra.mxu3 %v1321_v6  ;;  %v1324_v62 = vmul.f32 %v2384_v61, %v2384_v61 }
 0x815   : > { %1367 = vmatmul.f32.gmra.mxu0 %v1324_v62 }
 0x816   : > { %v1291_v0 = vpop.f32.mrf.mxu2 }
 0x817   : > { %v2388_v1 = vsub.f32 %v1215_v45, %v1291_v0  ;;  %v1469_v45 = vperm.slane %v2367_v19, 1 }
 0x819   : > { %v1323_v2 = vmul.f32 %v2388_v1, %v2388_v1 }
 0x81b   : > { %1344 = vmatmul.f32.gmra.mxu3 %v1323_v2 }
 0x88a   : > { %v1365_v3 = vpop.f32.mrf.mxu0 }
 0x892   : > { %v1368_v8 = vpop.f32.mrf.mxu0 }
 0x896   : > { %v1342_v4 = vpop.f32.mrf.mxu3 }
 0x897   : > { %v1366_v5 = vadd.f32 %v1365_v3, %v1342_v4 }
 0x899   : > { %v1371_v7 = vmul.f32 0.03125, %v1366_v5 }
 0x89b   : > { %1810 = vmatmul.msk.f32.vlgmr.msrb.gmra.mxu2 %vm367_vm6, %v1371_v7  ;;  %1812 = vmatmul.msk.f32.vlgmr.msrb.gmra.mxu1 %vm367_vm6, %v1371_v7 }
 0x89e   : > { %v1345_v9 = vpop.f32.mrf.mxu3 }
 0x89f   : > { %v1369_v10 = vadd.f32 %v1368_v8, %v1345_v9 }
 0x8a1   : > { %v1372_v11 = vmul.f32 0.03125, %v1369_v10 }
 0x8a3   : > { %1811 = vmatmul.msk.f32.gmra.mxu2 %vm367_vm6, %v1372_v11  ;;  %1813 = vmatmul.msk.f32.gmra.mxu1 %vm367_vm6, %v1372_v11 }
 0x918   : > { %v1419_v12 = vpop.f32.mrf.mxu1 }
 0x919   : > { %v1420_v13 = vadd.f32 1e-05, %v1419_v12 }
 0x91b   : > { %1904 = vrsqrt.f32 %v1420_v13  ;;  %vm1441_vm1 = vweird.f32 %v1420_v13 }
 0x91e   : > { %v1396_v14 = vpop.f32.mrf.mxu2 }
 0x91f   : > { %v1397_v63 = vadd.f32 1e-05, %v1396_v14 }
 0x920   : > { %v1422_v16 = vpop.f32.mrf.mxu1 }
 0x921   : > { %v1905_v15 = vpop.eup %1904  ;;  %1906 = vrsqrt.f32 %v1397_v63  ;;  %v1423_v17 = vadd.f32 1e-05, %v1422_v16  ;;  %vm1431_vm2 = vweird.f32 %v1397_v63 }
 0x922   : > { %v1436_v18 = vmul.f32 %v1905_v15, %v1420_v13  ;;  %vm1442_vm0 = vweird.f32 %v1905_v15 }
 0x923   : > { %1908 = vrsqrt.f32 %v1423_v17  ;;  %vm1443_vm6 = vmor %vm1441_vm1, %vm1442_vm0  ;;  %vm1461_vm5 = vweird.f32 %v1423_v17 }
 0x924   : > { %v1437_v21 = vmul.f32 %v1905_v15, %v1436_v18 }
 0x926   : > { %v1438_v22 = vmul.f32 0.5, %v1437_v21  ;;  %v1399_v23 = vpop.f32.mrf.mxu2 }
 0x927   : > { %v1907_v24 = vpop.eup %1906  ;;  %v1400_v25 = vadd.f32 1e-05, %v1399_v23 }
 0x928   : > { %v1439_v26 = vsub.f32 1.5, %v1438_v22  ;;  %v1426_v27 = vmul.f32 %v1907_v24, %v1397_v63  ;;  %vm1432_vm15 = vweird.f32 %v1907_v24 }
 0x929   : > { %v1909_v28 = vpop.eup %1908  ;;  %1910 = vrsqrt.f32 %v1400_v25  ;;  %vm1433_vm4 = vmor %vm1431_vm2, %vm1432_vm15  ;;  %vm1451_vm9 = vweird.f32 %v1400_v25 }
 0x92a   : > { %v1440_v29 = vmul.f32 %v1905_v15, %v1439_v26  ;;  %v1427_v30 = vmul.f32 %v1907_v24, %v1426_v27  ;;  %v1456_v31 = vmul.f32 %v1909_v28, %v1423_v17  ;;  %vm1462_vm3 = vweird.f32 %v1909_v28 }
 0x92b   : > { %vm1463_vm7 = vmor %vm1461_vm5, %vm1462_vm3 }
 0x92c   : > { %v1444_v33 = vsel %vm1443_vm6, %v1905_v15, %v1440_v29  ;;  %v1428_v34 = vmul.f32 0.5, %v1427_v30  ;;  %v1457_v35 = vmul.f32 %v1909_v28, %v1456_v31 }
 0x92d   : > { %v1466_v37 = vmul.f32 %v1444_v33, %v1318_v56 }
 0x92e   : > { %v1429_v38 = vsub.f32 1.5, %v1428_v34  ;;  %v1458_v39 = vmul.f32 0.5, %v1457_v35 }
 0x92f   : > { %v1911_v40 = vpop.eup %1910  ;;  %v1472_v41 = vmul.f32 %v1470_v32, %v1466_v37 }
 0x930   : > { %v1430_v42 = vmul.f32 %v1907_v24, %v1429_v38  ;;  %v1459_v43 = vsub.f32 1.5, %v1458_v39  ;;  %v1446_v44 = vmul.f32 %v1911_v40, %v1400_v25  ;;  %vm1452_vm8 = vweird.f32 %v1911_v40 }
 0x931   : > { %v1478_v20 = vadd.f32 %v1476_v36, %v1472_v41  ;;  %vm1453_vm10 = vmor %vm1451_vm9, %vm1452_vm8 }
 0x932   : > { %v1434_v46 = vsel %vm1433_vm4, %v1907_v24, %v1430_v42  ;;  %v1460_v47 = vmul.f32 %v1909_v28, %v1459_v43  ;;  %v1447_v48 = vmul.f32 %v1911_v40, %v1446_v44 }
 0x933   : > { %1482 = vst [vmem:[%s2402_s24 + $0x8] sm:$0xff] %v1478_v20  ;;  %v1465_v50 = vmul.f32 %v1434_v46, %v2380_v59 }
 0x934   : > { %v1464_v51 = vsel %vm1463_vm7, %v1909_v28, %v1460_v47  ;;  %v1448_v52 = vmul.f32 0.5, %v1447_v48 }
 0x935   : > { %v1471_v53 = vmul.f32 %v1469_v45, %v1465_v50  ;;  %v1468_v54 = vmul.f32 %v1464_v51, %v2384_v61 }
 0x936   : > { %v1449_v55 = vsub.f32 1.5, %v1448_v52 }
 0x937   : > { %v1477_v56 = vadd.f32 %v1475_v49, %v1471_v53  ;;  %v1474_v57 = vmul.f32 %v1470_v32, %v1468_v54 }
 0x938   : > { %v1450_v58 = vmul.f32 %v1911_v40, %v1449_v55 }
 0x939   : > { %1481 = vst [vmem:[%s2402_s24] sm:$0xff] %v1477_v56  ;;  %v1480_v60 = vadd.f32 %v1476_v36, %v1474_v57 }
 0x93a   : > { %v1454_v19 = vsel %vm1453_vm10, %v1911_v40, %v1450_v58 }
 0x93b   : > { %1484 = vst [vmem:[%s2402_s24 + $0x18] sm:$0xff] %v1480_v60  ;;  %v1467_v59 = vmul.f32 %v1454_v19, %v2388_v1 }
 0x93d   : > { %v1473_v6 = vmul.f32 %v1469_v45, %v1467_v59 }
 0x93f   : > { %v1479_v62 = vadd.f32 %v1475_v49, %v1473_v6 }
 0x941   : > { %1483 = vst [vmem:[%s2402_s24 + $0x10] sm:$0xff] %v1479_v62 }
 0x942 PF: > { %s16_s21 = sadd.s32 1, %s1918_s21  }
 0x943   : > { %p13_p5 = scmp.ge.s32.totalorder %s16_s21, 4  }
 0x945   :  { %15 = sbr.rel (!%p13_p5) target bundleno = 1 (0x1), region = 79 }

</bundles_post_ra>
